<compile_context>
chip_gen: v7x
topology: tpu7x:2x2x1
jax: 0.10.0
libtpu: 0.0.40
codegen_flags: <defaults>
</compile_context>

<pallas_src>
import jax
import jax.numpy as jnp
from jax import lax
from jax.experimental import pallas as pl
from jax.experimental.pallas import tpu as pltpu

EPS = 1e-5
_VMEM_LIMIT = 32 * 1024 * 1024

_CP1 = pltpu.CompilerParams(dimension_semantics=("parallel",),
                            vmem_limit_bytes=_VMEM_LIMIT)
_CP2 = pltpu.CompilerParams(dimension_semantics=("parallel", "parallel"),
                            vmem_limit_bytes=_VMEM_LIMIT)


def _pick_tile(total, gran, target):
    """Largest divisor of `total` that is a multiple of `gran` and <= target.

    Falls back to `total` (full extent is always BlockSpec-legal); for very
    large, oddly-shaped inputs that fallback can be VMEM-heavy.
    """
    if total <= target:
        return total
    t = (target // gran) * gran
    while t >= gran:
        if total % t == 0:
            return t
        t -= gran
    return total


def _pick_h_tile(H, W, target_rows):
    """Largest divisor th of H with th*W <= target_rows (>= 1)."""
    best = 1
    for th in range(1, H + 1):
        if H % th == 0 and th * W <= target_rows:
            best = th
    return best


# --------------------------------------------------------------------------
# K1: conv1 (1x1, bias dropped) on NCHW input + per-channel sum / sum-sq.
#     Input block is channel-major (Cin, tile); transposed in-kernel (XLU).
# --------------------------------------------------------------------------
def _k1_kernel(x_ref, w_ref, y1_ref, st_ref):
    xt = x_ref[0].T                                            # (tr, Cin) f32
    y = jnp.dot(xt.astype(jnp.bfloat16), w_ref[...],
                preferred_element_type=jnp.float32)            # (tr, Cmid) f32
    y1_ref[0] = y.astype(jnp.bfloat16)
    st_ref[0, 0] = jnp.concatenate(
        [jnp.sum(y, axis=0, keepdims=True),
         jnp.sum(y * y, axis=0, keepdims=True)], axis=0)


def _stage1(x_nc_hw, w1_bf16):
    N, Cin, HW = x_nc_hw.shape
    Cmid = w1_bf16.shape[1]
    tr = _pick_tile(HW, 128, 4096)
    T = HW // tr
    return pl.pallas_call(
        _k1_kernel,
        out_shape=(jax.ShapeDtypeStruct((N, HW, Cmid), jnp.bfloat16),
                   jax.ShapeDtypeStruct((N, T, 2, Cmid), jnp.float32)),
        grid=(N, T),
        in_specs=[pl.BlockSpec((1, Cin, tr), lambda n, t: (n, 0, t)),
                  pl.BlockSpec((Cin, Cmid), lambda n, t: (0, 0))],
        out_specs=(pl.BlockSpec((1, tr, Cmid), lambda n, t: (n, t, 0)),
                   pl.BlockSpec((1, 1, 2, Cmid), lambda n, t: (n, t, 0, 0))),
        compiler_params=_CP2,
    )(x_nc_hw, w1_bf16)


# --------------------------------------------------------------------------
# K2: BN1 apply + ReLU + ConvTranspose2d(3x3, s=2, p=1, op=1).
#     H-tiled with a 1-row halo; four accumulated per-tap matmuls; output
#     parity classes concatenated on lanes: lane = (2p+q)*Cout + c.
# --------------------------------------------------------------------------
def _k2_kernel(y1m_ref, y1h_ref, s_ref, b_ref, w_ref, y2_ref, st_ref):
    th = y1m_ref.shape[1]
    W = y1m_ref.shape[2]
    C = y1m_ref.shape[3]
    co4 = w_ref.shape[1]

    scale = s_ref[...].reshape(1, 1, C)
    shift = b_ref[...].reshape(1, 1, C)

    # Main tile rows + 1 halo row (first row of the next H-tile).
    raw = jnp.concatenate([y1m_ref[0].astype(jnp.float32),
                           y1h_ref[0].astype(jnp.float32)], axis=0)  # (th+1,W,C)
    h = jnp.maximum(raw * scale + shift, 0.0)

    # On the last H-tile there is no row below the image -> zero the halo row.
    is_last = pl.program_id(1) == pl.num_programs(1) - 1
    rid = lax.broadcasted_iota(jnp.int32, h.shape, 0)
    h = jnp.where(jnp.logical_and(is_last, rid == th), 0.0, h)

    # j+1 shifted view (zero column at j = W-1); shared by both lower taps.
    zcol = jnp.zeros((th + 1, 1, C), jnp.float32)
    hw = jnp.concatenate([h[:, 1:, :], zcol], axis=1)                # (th+1,W,C)

    R = th * W
    bf16 = jnp.bfloat16
    f32 = jnp.float32
    # Taps: x[i,j], x[i,j+1], x[i+1,j], x[i+1,j+1]  <->  weight row-blocks.
    acc = jnp.dot(h[:th].reshape(R, C).astype(bf16), w_ref[0:C, :],
                  preferred_element_type=f32)
    acc += jnp.dot(hw[:th].reshape(R, C).astype(bf16), w_ref[C:2 * C, :],
                   preferred_element_type=f32)
    acc += jnp.dot(h[1:].reshape(R, C).astype(bf16), w_ref[2 * C:3 * C, :],
                   preferred_element_type=f32)
    acc += jnp.dot(hw[1:].reshape(R, C).astype(bf16), w_ref[3 * C:4 * C, :],
                   preferred_element_type=f32)

    y2_ref[0] = acc.reshape(th, W, co4).astype(jnp.bfloat16)
    st_ref[0, 0] = jnp.concatenate(
        [jnp.sum(acc, axis=0, keepdims=True),
         jnp.sum(acc * acc, axis=0, keepdims=True)], axis=0)


def _stage2(y1_4d, scale1, shift1, w2_blk_bf16):
    N, H, W, C = y1_4d.shape
    co4 = w2_blk_bf16.shape[1]
    th = _pick_h_tile(H, W, 2048)
    TH = H // th
    return pl.pallas_call(
        _k2_kernel,
        out_shape=(jax.ShapeDtypeStruct((N, H, W, co4), jnp.bfloat16),
                   jax.ShapeDtypeStruct((N, TH, 2, co4), jnp.float32)),
        grid=(N, TH),
        in_specs=[
            pl.BlockSpec((1, th, W, C), lambda n, t: (n, t, 0, 0)),
            # Halo: one row at (t+1)*th, clamped; kernel zeroes it on the last tile.
            pl.BlockSpec((1, 1, W, C),
                         lambda n, t: (n, jnp.minimum((t + 1) * th, H - 1), 0, 0)),
            pl.BlockSpec((1, C), lambda n, t: (0, 0)),
            pl.BlockSpec((1, C), lambda n, t: (0, 0)),
            pl.BlockSpec((4 * C, co4), lambda n, t: (0, 0)),
        ],
        out_specs=(pl.BlockSpec((1, th, W, co4), lambda n, t: (n, t, 0, 0)),
                   pl.BlockSpec((1, 1, 2, co4), lambda n, t: (n, t, 0, 0))),
        compiler_params=_CP2,
    )(y1_4d, y1_4d, scale1.reshape(1, C), shift1.reshape(1, C), w2_blk_bf16)


# --------------------------------------------------------------------------
# K3: BN2 apply + ReLU + conv3 (1x1) on the parity-concatenated layout via a
#     block-diagonal weight; emits parity-concatenated pre-BN3 activations.
# --------------------------------------------------------------------------
def _k3_kernel(y2_ref, s_ref, b_ref, w_ref, y3_ref, st_ref):
    h = jnp.maximum(y2_ref[...].astype(jnp.float32) * s_ref[...] + b_ref[...], 0.0)
    y = jnp.dot(h.astype(jnp.bfloat16), w_ref[...],
                preferred_element_type=jnp.float32)
    y3_ref[...] = y.astype(jnp.bfloat16)
    st_ref[0] = jnp.concatenate(
        [jnp.sum(y, axis=0, keepdims=True),
         jnp.sum(y * y, axis=0, keepdims=True)], axis=0)


def _stage3(y2_2d, scale4, shift4, w3_blk_bf16):
    P, c4 = y2_2d.shape
    co4 = w3_blk_bf16.shape[1]
    tp = _pick_tile(P, 8, 2048)
    T = P // tp
    return pl.pallas_call(
        _k3_kernel,
        out_shape=(jax.ShapeDtypeStruct((P, co4), jnp.bfloat16),
                   jax.ShapeDtypeStruct((T, 2, co4), jnp.float32)),
        grid=(T,),
        in_specs=[pl.BlockSpec((tp, c4), lambda i: (i, 0)),
                  pl.BlockSpec((1, c4), lambda i: (0, 0)),
                  pl.BlockSpec((1, c4), lambda i: (0, 0)),
                  pl.BlockSpec((c4, co4), lambda i: (0, 0))],
        out_specs=(pl.BlockSpec((tp, co4), lambda i: (i, 0)),
                   pl.BlockSpec((1, 2, co4), lambda i: (i, 0, 0))),
        compiler_params=_CP1,
    )(y2_2d, scale4.reshape(1, c4), shift4.reshape(1, c4), w3_blk_bf16)


# --------------------------------------------------------------------------
# K4: BN3 apply + ReLU (elementwise, lane-dense parity-concat layout, f32 out)
# --------------------------------------------------------------------------
def _k4_kernel(y_ref, s_ref, b_ref, o_ref):
    o_ref[...] = jnp.maximum(
        y_ref[...].astype(jnp.float32) * s_ref[...] + b_ref[...], 0.0)


def _stage4(y3_2d, scale4, shift4):
    P, c4 = y3_2d.shape
    tp = _pick_tile(P, 8, 4096)
    return pl.pallas_call(
        _k4_kernel,
        out_shape=jax.ShapeDtypeStruct((P, c4), jnp.float32),
        grid=(P // tp,),
        in_specs=[pl.BlockSpec((tp, c4), lambda i: (i, 0)),
                  pl.BlockSpec((1, c4), lambda i: (0, 0)),
                  pl.BlockSpec((1, c4), lambda i: (0, 0))],
        out_specs=pl.BlockSpec((tp, c4), lambda i: (i, 0)),
        compiler_params=_CP1,
    )(y3_2d, scale4.reshape(1, c4), shift4.reshape(1, c4))


# --------------------------------------------------------------------------
# Glue helpers (tiny per-channel math, weight packing)
# --------------------------------------------------------------------------
def _bn_scale_shift(partial_stats, count, gamma, beta, n_parity):
    """partial_stats: (..., 2, n_parity*C) -> per-channel (scale, shift)."""
    c_lanes = partial_stats.shape[-1]
    s = partial_stats.reshape(-1, 2, c_lanes).sum(axis=0)              # (2, np*C)
    s = s.reshape(2, n_parity, c_lanes // n_parity).sum(axis=1)        # (2, C)
    mean = s[0] / count
    var = jnp.maximum(s[1] / count - mean * mean, 0.0)                 # batch var
    scale = gamma.astype(jnp.float32) / jnp.sqrt(var + EPS)
    shift = beta.astype(jnp.float32) - mean * scale
    return scale, shift


def _pack_deconv_block(w2):
    """PyTorch ConvTranspose2d weight (Cin,Cout,3,3) -> (4*Cin, 4*Cout) block.

    Row blocks = taps [x, x(j+1), x(i+1), x(i+1,j+1)];
    col blocks = output parity classes [(0,0), (0,1), (1,0), (1,1)].
    """
    t = jnp.transpose(w2, (2, 3, 0, 1)).astype(jnp.float32)  # (ky,kx,Cin,Cout)
    C, Co = t.shape[2], t.shape[3]
    Z = jnp.zeros((C, Co), jnp.float32)
    rows = [
        jnp.concatenate([t[1, 1], t[1, 2], t[2, 1], t[2, 2]], axis=1),  # x[i, j]
        jnp.concatenate([Z,       t[1, 0], Z,       t[2, 0]], axis=1),  # x[i, j+1]
        jnp.concatenate([Z,       Z,       t[0, 1], t[0, 2]], axis=1),  # x[i+1, j]
        jnp.concatenate([Z,       Z,       Z,       t[0, 0]], axis=1),  # x[i+1, j+1]
    ]
    return jnp.concatenate(rows, axis=0)                     # (4C, 4Co)


# --------------------------------------------------------------------------
# Full DecoderBlock forward (NCHW in -> NCHW out, like the PyTorch module)
# --------------------------------------------------------------------------
@jax.jit
def decoder_block_forward(x_nchw, params):
    x = x_nchw.astype(jnp.float32)
    N, Cin, H, W = x.shape
    Cmid = params["w1"].shape[1]
    Cout = params["w3"].shape[1]
    HW = H * W
    P = N * HW

    w1 = params["w1"].astype(jnp.bfloat16)
    w2_blk = _pack_deconv_block(params["w2"]).astype(jnp.bfloat16)
    w3_blk = jnp.kron(jnp.eye(4, dtype=jnp.float32),
                      params["w3"].astype(jnp.float32)).astype(jnp.bfloat16)

    # Stage 1: conv1 (NCHW blocks, transpose folded in-kernel) + stats
    y1, st1 = _stage1(x.reshape(N, Cin, HW), w1)
    s1, b1 = _bn_scale_shift(st1, float(P), params["g1"], params["be1"], 1)

    # Stage 2: BN1+ReLU + deconv (H-tiled, halo, 4 accumulated matmuls) + stats
    y2, st2 = _stage2(y1.reshape(N, H, W, Cmid), s1, b1, w2_blk)
    s2, b2 = _bn_scale_shift(st2, float(4 * P), params["g2"], params["be2"], 4)

    # Stage 3: BN2+ReLU + conv3 (block-diagonal on parity layout) + stats
    y3, st3 = _stage3(y2.reshape(P, 4 * Cmid), jnp.tile(s2, 4), jnp.tile(b2, 4),
                      w3_blk)
    s3, b3 = _bn_scale_shift(st3, float(4 * P), params["g3"], params["be3"], 4)

    # Stage 4: BN3+ReLU (f32 output)
    out2d = _stage4(y3, jnp.tile(s3, 4), jnp.tile(b3, 4))

    # De-interleave parity classes (lane = (2p+q)*Cout + c) and go to NCHW in
    # a single XLA transpose pass.
    out = out2d.reshape(N, H, W, 2, 2, Cout)
    out = jnp.transpose(out, (0, 5, 1, 3, 2, 4)).reshape(N, Cout, 2 * H, 2 * W)
    return out


# --------------------------------------------------------------------------
# Pure-JAX f32 reference (independent: lax.conv_general_dilated for the
# deconv, biases included -- they are cancelled by train-mode BN).
# --------------------------------------------------------------------------
def reference_forward(x_nchw, params):
    x = jnp.transpose(x_nchw, (0, 2, 3, 1)).astype(jnp.float32)

    def bn_relu(y, g, be):
        mean = jnp.mean(y, axis=(0, 1, 2), keepdims=True)
        var = jnp.mean((y - mean) ** 2, axis=(0, 1, 2), keepdims=True)
        return jnp.maximum((y - mean) / jnp.sqrt(var + EPS) * g + be, 0.0)

    y = jnp.einsum("nhwc,cd->nhwd", x, params["w1"]) + params["b1"]
    y = bn_relu(y, params["g1"], params["be1"])

    w2 = params["w2"]  # (Cin, Cout, 3, 3) -- PyTorch ConvTranspose2d layout
    k = jnp.transpose(w2[:, :, ::-1, ::-1], (2, 3, 0, 1))  # HWIO, flipped
    y = lax.conv_general_dilated(
        y, k, window_strides=(1, 1), padding=((1, 2), (1, 2)),
        lhs_dilation=(2, 2), dimension_numbers=("NHWC", "HWIO", "NHWC"),
    ) + params["b2"]
    y = bn_relu(y, params["g2"], params["be2"])

    y = jnp.einsum("nhwc,cd->nhwd", y, params["w3"]) + params["b3"]
    y = bn_relu(y, params["g3"], params["be3"])
    return jnp.transpose(y, (0, 3, 1, 2))


if __name__ == "__main__":
    N, Cin, H, W = 2, 32, 8, 8
    n_filters = 16
    Cmid = Cin // 4

    key = jax.random.PRNGKey(0)
    ks = jax.random.split(key, 14)

    params = {
        "w1": 0.1 * jax.random.normal(ks[0], (Cin, Cmid), jnp.float32),
        "b1": 0.1 * jax.random.normal(ks[1], (Cmid,), jnp.float32),
        "g1": 1.0 + 0.1 * jax.random.normal(ks[2], (Cmid,), jnp.float32),
        "be1": 0.1 * jax.random.normal(ks[3], (Cmid,), jnp.float32),
        "w2": 0.1 * jax.random.normal(ks[4], (Cmid, Cmid, 3, 3), jnp.float32),
        "b2": 0.1 * jax.random.normal(ks[5], (Cmid,), jnp.float32),
        "g2": 1.0 + 0.1 * jax.random.normal(ks[6], (Cmid,), jnp.float32),
        "be2": 0.1 * jax.random.normal(ks[7], (Cmid,), jnp.float32),
        "w3": 0.1 * jax.random.normal(ks[8], (Cmid, n_filters), jnp.float32),
        "b3": 0.1 * jax.random.normal(ks[9], (n_filters,), jnp.float32),
        "g3": 1.0 + 0.1 * jax.random.normal(ks[10], (n_filters,), jnp.float32),
        "be3": 0.1 * jax.random.normal(ks[11], (n_filters,), jnp.float32),
    }

    x = jax.random.normal(ks[13], (N, Cin, H, W), jnp.float32)

    out = decoder_block_forward(x, params)
    out = jax.block_until_ready(out)

    assert out.shape == (N, n_filters, 2 * H, 2 * W), out.shape

    ref = reference_forward(x, params)
    err = jnp.abs(out - ref)
    max_err = float(jnp.max(err))
    mean_err = float(jnp.mean(err))
    # bf16 inter-stage storage + bf16 MXU operands -> tolerances sized for bf16.
    if not (max_err < 1e-1 and mean_err < 1e-2):
        raise AssertionError(
            f"Pallas kernel mismatch vs reference: max={max_err} mean={mean_err}")

    print("KERNEL_OK")
</pallas_src>

<mosaic_0001>
module attributes {stable_mosaic.version = 11 : i64} {
  func.func @_k1_kernel(%arg0: i32, %arg1: i32, %arg2: memref<1x32x64xf32, #tpu.memory_space<vmem>>, %arg3: memref<32x8xbf16, #tpu.memory_space<vmem>>, %arg4: memref<1x64x8xbf16, #tpu.memory_space<vmem>>, %arg5: memref<1x1x2x8xf32, #tpu.memory_space<vmem>>) attributes {dimension_semantics = [#tpu.dimension_semantics<parallel>, #tpu.dimension_semantics<parallel>], iteration_bounds = array<i64: 2, 1>, scalar_prefetch = 0 : i64, scratch_operands = 0 : i64, tpu.core_type = #tpu.core_type<tc>, window_params = [{transform_indices = @transform_0, window_bounds = array<i64: 1, 32, 64>}, {pipeline_mode = #tpu.pipeline_mode<synchronous>, transform_indices = @transform_1, window_bounds = array<i64: 32, 8>}, {transform_indices = @transform_2, window_bounds = array<i64: 1, 64, 8>}, {transform_indices = @transform_3, window_bounds = array<i64: 1, 1, 2, 8>}]} {
    %c0 = arith.constant 0 : index
    %c0_0 = arith.constant 0 : index
    %c0_1 = arith.constant 0 : index
    %0 = vector.load %arg2[%c0, %c0_0, %c0_1] : memref<1x32x64xf32, #tpu.memory_space<vmem>>, vector<1x32x64xf32>
    %1 = vector.shape_cast %0 : vector<1x32x64xf32> to vector<32x64xf32>
    %2 = tpu.transpose %1, [1, 0] : vector<32x64xf32> -> vector<64x32xf32>
    %3 = arith.truncf %2 : vector<64x32xf32> to vector<64x32xbf16>
    %c0_2 = arith.constant 0 : index
    %c0_3 = arith.constant 0 : index
    %4 = vector.load %arg3[%c0_2, %c0_3] : memref<32x8xbf16, #tpu.memory_space<vmem>>, vector<32x8xbf16>
    %cst = arith.constant dense<0.000000e+00> : vector<64x8xf32>
    %5 = tpu.matmul %3, %4, %cst {dimension_numbers = #tpu.dot_dimension_numbers<[1], [0], [0], [1], [0, 0, 1, 1], [], []>} : vector<64x32xbf16>, vector<32x8xbf16>, vector<64x8xf32> -> vector<64x8xf32>
    %6 = arith.truncf %5 : vector<64x8xf32> to vector<64x8xbf16>
    %c0_4 = arith.constant 0 : index
    %c0_5 = arith.constant 0 : index
    %c0_6 = arith.constant 0 : index
    %7 = vector.load %arg4[%c0_4, %c0_5, %c0_6] : memref<1x64x8xbf16, #tpu.memory_space<vmem>>, vector<1x64x8xbf16>
    %8 = vector.shape_cast %7 : vector<1x64x8xbf16> to vector<64x8xbf16>
    %9 = vector.shape_cast %6 : vector<64x8xbf16> to vector<1x64x8xbf16>
    tpu.vector_store %arg4[%c0_4, %c0_5, %c0_6], %9 {strides = array<i32>} : memref<1x64x8xbf16, #tpu.memory_space<vmem>>, vector<1x64x8xbf16>,
    %cst_7 = arith.constant dense<0.000000e+00> : vector<8xf32>
    %10 = vector.multi_reduction <add>, %5, %cst_7 [0] : vector<64x8xf32> to vector<8xf32>
    %11 = vector.shape_cast %10 : vector<8xf32> to vector<1x8xf32>
    %12 = arith.mulf %5, %5 : vector<64x8xf32>
    %cst_8 = arith.constant dense<0.000000e+00> : vector<8xf32>
    %13 = vector.multi_reduction <add>, %12, %cst_8 [0] : vector<64x8xf32> to vector<8xf32>
    %14 = vector.shape_cast %13 : vector<8xf32> to vector<1x8xf32>
    %15 = tpu.concatenate %11, %14 in 0 : vector<1x8xf32>, vector<1x8xf32> -> vector<2x8xf32>
    %c0_9 = arith.constant 0 : index
    %c0_10 = arith.constant 0 : index
    %c0_11 = arith.constant 0 : index
    %c0_12 = arith.constant 0 : index
    %16 = vector.load %arg5[%c0_9, %c0_10, %c0_11, %c0_12] : memref<1x1x2x8xf32, #tpu.memory_space<vmem>>, vector<1x1x2x8xf32>
    %17 = vector.shape_cast %16 : vector<1x1x2x8xf32> to vector<2x8xf32>
    %18 = vector.shape_cast %15 : vector<2x8xf32> to vector<1x1x2x8xf32>
    tpu.vector_store %arg5[%c0_9, %c0_10, %c0_11, %c0_12], %18 {strides = array<i32>} : memref<1x1x2x8xf32, #tpu.memory_space<vmem>>, vector<1x1x2x8xf32>,
    return
  }
  func.func @transform_0(%arg0: i32, %arg1: i32) -> (i32, i32, i32) {
    %c0_i32 = arith.constant 0 : i32
    %c0_i32_0 = arith.constant 0 : i32
    return %arg0, %c0_i32, %arg1 : i32, i32, i32
  }
  func.func @transform_1(%arg0: i32, %arg1: i32) -> (i32, i32) {
    %c0_i32 = arith.constant 0 : i32
    %c0_i32_0 = arith.constant 0 : i32
    %c0_i32_1 = arith.constant 0 : i32
    return %c0_i32, %c0_i32_0 : i32, i32
  }
  func.func @transform_2(%arg0: i32, %arg1: i32) -> (i32, i32, i32) {
    %c0_i32 = arith.constant 0 : i32
    %c0_i32_0 = arith.constant 0 : i32
    return %arg0, %arg1, %c0_i32 : i32, i32, i32
  }
  func.func @transform_3(%arg0: i32, %arg1: i32) -> (i32, i32, i32, i32) {
    %c0_i32 = arith.constant 0 : i32
    %c0_i32_0 = arith.constant 0 : i32
    %c0_i32_1 = arith.constant 0 : i32
    return %arg0, %arg1, %c0_i32, %c0_i32_0 : i32, i32, i32, i32
  }
}

module attributes {stable_mosaic.version = 11 : i64} {
  func.func @_k2_kernel(%arg0: i32, %arg1: i32, %arg2: memref<1x8x8x8xbf16, #tpu.memory_space<vmem>>, %arg3: memref<1x1x8x8xbf16, #tpu.memory_space<vmem>>, %arg4: memref<1x8xf32, #tpu.memory_space<vmem>>, %arg5: memref<1x8xf32, #tpu.memory_space<vmem>>, %arg6: memref<32x32xbf16, #tpu.memory_space<vmem>>, %arg7: memref<1x8x8x32xbf16, #tpu.memory_space<vmem>>, %arg8: memref<1x1x2x32xf32, #tpu.memory_space<vmem>>) attributes {dimension_semantics = [#tpu.dimension_semantics<parallel>, #tpu.dimension_semantics<parallel>], iteration_bounds = array<i64: 2, 1>, scalar_prefetch = 0 : i64, scratch_operands = 0 : i64, tpu.core_type = #tpu.core_type<tc>, window_params = [{transform_indices = @transform_0, window_bounds = array<i64: 1, 8, 8, 8>}, {transform_indices = @transform_1, window_bounds = array<i64: 1, 1, 8, 8>}, {pipeline_mode = #tpu.pipeline_mode<synchronous>, transform_indices = @transform_2, window_bounds = array<i64: 1, 8>}, {pipeline_mode = #tpu.pipeline_mode<synchronous>, transform_indices = @transform_3, window_bounds = array<i64: 1, 8>}, {pipeline_mode = #tpu.pipeline_mode<synchronous>, transform_indices = @transform_4, window_bounds = array<i64: 32, 32>}, {transform_indices = @transform_5, window_bounds = array<i64: 1, 8, 8, 32>}, {transform_indices = @transform_6, window_bounds = array<i64: 1, 1, 2, 32>}]} {
    %c0 = arith.constant 0 : index
    %c0_0 = arith.constant 0 : index
    %0 = vector.load %arg4[%c0, %c0_0] : memref<1x8xf32, #tpu.memory_space<vmem>>, vector<1x8xf32>
    %1 = vector.shape_cast %0 : vector<1x8xf32> to vector<1x1x8xf32>
    %c0_1 = arith.constant 0 : index
    %c0_2 = arith.constant 0 : index
    %2 = vector.load %arg5[%c0_1, %c0_2] : memref<1x8xf32, #tpu.memory_space<vmem>>, vector<1x8xf32>
    %3 = vector.shape_cast %2 : vector<1x8xf32> to vector<1x1x8xf32>
    %c0_3 = arith.constant 0 : index
    %c0_4 = arith.constant 0 : index
    %c0_5 = arith.constant 0 : index
    %c0_6 = arith.constant 0 : index
    %4 = vector.load %arg2[%c0_3, %c0_4, %c0_5, %c0_6] : memref<1x8x8x8xbf16, #tpu.memory_space<vmem>>, vector<1x8x8x8xbf16>
    %5 = vector.shape_cast %4 : vector<1x8x8x8xbf16> to vector<8x8x8xbf16>
    %6 = arith.extf %5 : vector<8x8x8xbf16> to vector<8x8x8xf32>
    %c0_7 = arith.constant 0 : index
    %c0_8 = arith.constant 0 : index
    %c0_9 = arith.constant 0 : index
    %c0_10 = arith.constant 0 : index
    %7 = vector.load %arg3[%c0_7, %c0_8, %c0_9, %c0_10] : memref<1x1x8x8xbf16, #tpu.memory_space<vmem>>, vector<1x1x8x8xbf16>
    %8 = vector.shape_cast %7 : vector<1x1x8x8xbf16> to vector<1x8x8xbf16>
    %9 = arith.extf %8 : vector<1x8x8xbf16> to vector<1x8x8xf32>
    %10 = tpu.concatenate %6, %9 in 0 : vector<8x8x8xf32>, vector<1x8x8xf32> -> vector<9x8x8xf32>
    %11 = vector.broadcast %1 : vector<1x1x8xf32> to vector<9x8x8xf32>
    %12 = arith.mulf %10, %11 : vector<9x8x8xf32>
    %13 = vector.broadcast %3 : vector<1x1x8xf32> to vector<9x8x8xf32>
    %14 = arith.addf %12, %13 : vector<9x8x8xf32>
    %cst = arith.constant 0.000000e+00 : f32
    %15 = vector.broadcast %cst : f32 to vector<9x8x8xf32>
    %16 = arith.maximumf %14, %15 : vector<9x8x8xf32>
    %c0_i32 = arith.constant 0 : i32
    %17 = arith.cmpi eq, %arg1, %c0_i32 : i32
    %18 = tpu.iota {dimensions = array<i32: 0>} : vector<9x8x8xi32>
    %c8_i32 = arith.constant 8 : i32
    %19 = vector.broadcast %c8_i32 : i32 to vector<9x8x8xi32>
    %20 = arith.cmpi eq, %18, %19 : vector<9x8x8xi32>
    %21 = vector.broadcast %17 : i1 to vector<9x8x8xi1>
    %22 = arith.andi %21, %20 : vector<9x8x8xi1>
    %cst_11 = arith.constant 0.000000e+00 : f32
    %23 = vector.broadcast %cst_11 : f32 to vector<9x8x8xf32>
    %24 = arith.select %22, %23, %16 : vector<9x8x8xi1>, vector<9x8x8xf32>
    %cst_12 = arith.constant 0.000000e+00 : f32
    %25 = vector.broadcast %cst_12 : f32 to vector<9x1x8xf32>
    %26 = vector.extract_strided_slice %24 {offsets = [0, 1, 0], sizes = [9, 7, 8], strides = [1, 1, 1]} : vector<9x8x8xf32> to vector<9x7x8xf32>
    %27 = tpu.concatenate %26, %25 in 1 : vector<9x7x8xf32>, vector<9x1x8xf32> -> vector<9x8x8xf32>
    %28 = vector.extract_strided_slice %24 {offsets = [0, 0, 0], sizes = [8, 8, 8], strides = [1, 1, 1]} : vector<9x8x8xf32> to vector<8x8x8xf32>
    %29 = vector.shape_cast %28 : vector<8x8x8xf32> to vector<64x8xf32>
    %30 = arith.truncf %29 : vector<64x8xf32> to vector<64x8xbf16>
    %c0_13 = arith.constant 0 : index
    %c0_14 = arith.constant 0 : index
    %31 = vector.load %arg6[%c0_13, %c0_14] : memref<32x32xbf16, #tpu.memory_space<vmem>>, vector<8x32xbf16>
    %cst_15 = arith.constant dense<0.000000e+00> : vector<64x32xf32>
    %32 = tpu.matmul %30, %31, %cst_15 {dimension_numbers = #tpu.dot_dimension_numbers<[1], [0], [0], [1], [0, 0, 1, 1], [], []>} : vector<64x8xbf16>, vector<8x32xbf16>, vector<64x32xf32> -> vector<64x32xf32>
    %33 = vector.extract_strided_slice %27 {offsets = [0, 0, 0], sizes = [8, 8, 8], strides = [1, 1, 1]} : vector<9x8x8xf32> to vector<8x8x8xf32>
    %34 = vector.shape_cast %33 : vector<8x8x8xf32> to vector<64x8xf32>
    %35 = arith.truncf %34 : vector<64x8xf32> to vector<64x8xbf16>
    %c8 = arith.constant 8 : index
    %c0_16 = arith.constant 0 : index
    %36 = vector.load %arg6[%c8, %c0_16] : memref<32x32xbf16, #tpu.memory_space<vmem>>, vector<8x32xbf16>
    %cst_17 = arith.constant dense<0.000000e+00> : vector<64x32xf32>
    %37 = tpu.matmul %35, %36, %cst_17 {dimension_numbers = #tpu.dot_dimension_numbers<[1], [0], [0], [1], [0, 0, 1, 1], [], []>} : vector<64x8xbf16>, vector<8x32xbf16>, vector<64x32xf32> -> vector<64x32xf32>
    %38 = arith.addf %32, %37 : vector<64x32xf32>
    %39 = vector.extract_strided_slice %24 {offsets = [1, 0, 0], sizes = [8, 8, 8], strides = [1, 1, 1]} : vector<9x8x8xf32> to vector<8x8x8xf32>
    %40 = vector.shape_cast %39 : vector<8x8x8xf32> to vector<64x8xf32>
    %41 = arith.truncf %40 : vector<64x8xf32> to vector<64x8xbf16>
    %c16 = arith.constant 16 : index
    %c0_18 = arith.constant 0 : index
    %42 = vector.load %arg6[%c16, %c0_18] : memref<32x32xbf16, #tpu.memory_space<vmem>>, vector<8x32xbf16>
    %cst_19 = arith.constant dense<0.000000e+00> : vector<64x32xf32>
    %43 = tpu.matmul %41, %42, %cst_19 {dimension_numbers = #tpu.dot_dimension_numbers<[1], [0], [0], [1], [0, 0, 1, 1], [], []>} : vector<64x8xbf16>, vector<8x32xbf16>, vector<64x32xf32> -> vector<64x32xf32>
    %44 = arith.addf %38, %43 : vector<64x32xf32>
    %45 = vector.extract_strided_slice %27 {offsets = [1, 0, 0], sizes = [8, 8, 8], strides = [1, 1, 1]} : vector<9x8x8xf32> to vector<8x8x8xf32>
    %46 = vector.shape_cast %45 : vector<8x8x8xf32> to vector<64x8xf32>
    %47 = arith.truncf %46 : vector<64x8xf32> to vector<64x8xbf16>
    %c24 = arith.constant 24 : index
    %c0_20 = arith.constant 0 : index
    %48 = vector.load %arg6[%c24, %c0_20] : memref<32x32xbf16, #tpu.memory_space<vmem>>, vector<8x32xbf16>
    %cst_21 = arith.constant dense<0.000000e+00> : vector<64x32xf32>
    %49 = tpu.matmul %47, %48, %cst_21 {dimension_numbers = #tpu.dot_dimension_numbers<[1], [0], [0], [1], [0, 0, 1, 1], [], []>} : vector<64x8xbf16>, vector<8x32xbf16>, vector<64x32xf32> -> vector<64x32xf32>
    %50 = arith.addf %44, %49 : vector<64x32xf32>
    %51 = vector.shape_cast %50 : vector<64x32xf32> to vector<8x8x32xf32>
    %52 = arith.truncf %51 : vector<8x8x32xf32> to vector<8x8x32xbf16>
    %c0_22 = arith.constant 0 : index
    %c0_23 = arith.constant 0 : index
    %c0_24 = arith.constant 0 : index
    %c0_25 = arith.constant 0 : index
    %53 = vector.load %arg7[%c0_22, %c0_23, %c0_24, %c0_25] : memref<1x8x8x32xbf16, #tpu.memory_space<vmem>>, vector<1x8x8x32xbf16>
    %54 = vector.shape_cast %53 : vector<1x8x8x32xbf16> to vector<8x8x32xbf16>
    %55 = vector.shape_cast %52 : vector<8x8x32xbf16> to vector<1x8x8x32xbf16>
    tpu.vector_store %arg7[%c0_22, %c0_23, %c0_24, %c0_25], %55 {strides = array<i32>} : memref<1x8x8x32xbf16, #tpu.memory_space<vmem>>, vector<1x8x8x32xbf16>,
    %cst_26 = arith.constant dense<0.000000e+00> : vector<32xf32>
    %56 = vector.multi_reduction <add>, %50, %cst_26 [0] : vector<64x32xf32> to vector<32xf32>
    %57 = vector.shape_cast %56 : vector<32xf32> to vector<1x32xf32>
    %58 = arith.mulf %50, %50 : vector<64x32xf32>
    %cst_27 = arith.constant dense<0.000000e+00> : vector<32xf32>
    %59 = vector.multi_reduction <add>, %58, %cst_27 [0] : vector<64x32xf32> to vector<32xf32>
    %60 = vector.shape_cast %59 : vector<32xf32> to vector<1x32xf32>
    %61 = tpu.concatenate %57, %60 in 0 : vector<1x32xf32>, vector<1x32xf32> -> vector<2x32xf32>
    %c0_28 = arith.constant 0 : index
    %c0_29 = arith.constant 0 : index
    %c0_30 = arith.constant 0 : index
    %c0_31 = arith.constant 0 : index
    %62 = vector.load %arg8[%c0_28, %c0_29, %c0_30, %c0_31] : memref<1x1x2x32xf32, #tpu.memory_space<vmem>>, vector<1x1x2x32xf32>
    %63 = vector.shape_cast %62 : vector<1x1x2x32xf32> to vector<2x32xf32>
    %64 = vector.shape_cast %61 : vector<2x32xf32> to vector<1x1x2x32xf32>
    tpu.vector_store %arg8[%c0_28, %c0_29, %c0_30, %c0_31], %64 {strides = array<i32>} : memref<1x1x2x32xf32, #tpu.memory_space<vmem>>, vector<1x1x2x32xf32>,
    return
  }
  func.func @transform_0(%arg0: i32, %arg1: i32) -> (i32, i32, i32, i32) {
    %c0_i32 = arith.constant 0 : i32
    %c0_i32_0 = arith.constant 0 : i32
    %c0_i32_1 = arith.constant 0 : i32
    return %arg0, %arg1, %c0_i32, %c0_i32_0 : i32, i32, i32, i32
  }
  func.func @transform_1(%arg0: i32, %arg1: i32) -> (i32, i32, i32, i32) {
    %c1_i32 = arith.constant 1 : i32
    %0 = arith.addi %arg1, %c1_i32 : i32
    %c8_i32 = arith.constant 8 : i32
    %1 = arith.muli %0, %c8_i32 : i32
    %c7_i32 = arith.constant 7 : i32
    %2 = arith.minsi %1, %c7_i32 : i32
    %c0_i32 = arith.constant 0 : i32
    %c0_i32_0 = arith.constant 0 : i32
    %c0_i32_1 = arith.constant 0 : i32
    return %arg0, %2, %c0_i32, %c0_i32_0 : i32, i32, i32, i32
  }
  func.func @transform_2(%arg0: i32, %arg1: i32) -> (i32, i32) {
    %c0_i32 = arith.constant 0 : i32
    %c0_i32_0 = arith.constant 0 : i32
    %c0_i32_1 = arith.constant 0 : i32
    return %c0_i32, %c0_i32_0 : i32, i32
  }
  func.func @transform_3(%arg0: i32, %arg1: i32) -> (i32, i32) {
    %c0_i32 = arith.constant 0 : i32
    %c0_i32_0 = arith.constant 0 : i32
    %c0_i32_1 = arith.constant 0 : i32
    return %c0_i32, %c0_i32_0 : i32, i32
  }
  func.func @transform_4(%arg0: i32, %arg1: i32) -> (i32, i32) {
    %c0_i32 = arith.constant 0 : i32
    %c0_i32_0 = arith.constant 0 : i32
    %c0_i32_1 = arith.constant 0 : i32
    return %c0_i32, %c0_i32_0 : i32, i32
  }
  func.func @transform_5(%arg0: i32, %arg1: i32) -> (i32, i32, i32, i32) {
    %c0_i32 = arith.constant 0 : i32
    %c0_i32_0 = arith.constant 0 : i32
    %c0_i32_1 = arith.constant 0 : i32
    return %arg0, %arg1, %c0_i32, %c0_i32_0 : i32, i32, i32, i32
  }
  func.func @transform_6(%arg0: i32, %arg1: i32) -> (i32, i32, i32, i32) {
    %c0_i32 = arith.constant 0 : i32
    %c0_i32_0 = arith.constant 0 : i32
    %c0_i32_1 = arith.constant 0 : i32
    return %arg0, %arg1, %c0_i32, %c0_i32_0 : i32, i32, i32, i32
  }
}

module attributes {stable_mosaic.version = 11 : i64} {
  func.func @_k3_kernel(%arg0: i32, %arg1: memref<128x32xbf16, #tpu.memory_space<vmem>>, %arg2: memref<1x32xf32, #tpu.memory_space<vmem>>, %arg3: memref<1x32xf32, #tpu.memory_space<vmem>>, %arg4: memref<32x64xbf16, #tpu.memory_space<vmem>>, %arg5: memref<128x64xbf16, #tpu.memory_space<vmem>>, %arg6: memref<1x2x64xf32, #tpu.memory_space<vmem>>) attributes {dimension_semantics = [#tpu.dimension_semantics<parallel>], iteration_bounds = array<i64: 1>, scalar_prefetch = 0 : i64, scratch_operands = 0 : i64, tpu.core_type = #tpu.core_type<tc>, window_params = [{transform_indices = @transform_0, window_bounds = array<i64: 128, 32>}, {pipeline_mode = #tpu.pipeline_mode<synchronous>, transform_indices = @transform_1, window_bounds = array<i64: 1, 32>}, {pipeline_mode = #tpu.pipeline_mode<synchronous>, transform_indices = @transform_2, window_bounds = array<i64: 1, 32>}, {pipeline_mode = #tpu.pipeline_mode<synchronous>, transform_indices = @transform_3, window_bounds = array<i64: 32, 64>}, {transform_indices = @transform_4, window_bounds = array<i64: 128, 64>}, {transform_indices = @transform_5, window_bounds = array<i64: 1, 2, 64>}]} {
    %c0 = arith.constant 0 : index
    %c0_0 = arith.constant 0 : index
    %0 = vector.load %arg1[%c0, %c0_0] : memref<128x32xbf16, #tpu.memory_space<vmem>>, vector<128x32xbf16>
    %1 = arith.extf %0 : vector<128x32xbf16> to vector<128x32xf32>
    %c0_1 = arith.constant 0 : index
    %c0_2 = arith.constant 0 : index
    %2 = vector.load %arg2[%c0_1, %c0_2] : memref<1x32xf32, #tpu.memory_space<vmem>>, vector<1x32xf32>
    %3 = vector.broadcast %2 : vector<1x32xf32> to vector<128x32xf32>
    %4 = arith.mulf %1, %3 : vector<128x32xf32>
    %c0_3 = arith.constant 0 : index
    %c0_4 = arith.constant 0 : index
    %5 = vector.load %arg3[%c0_3, %c0_4] : memref<1x32xf32, #tpu.memory_space<vmem>>, vector<1x32xf32>
    %6 = vector.broadcast %5 : vector<1x32xf32> to vector<128x32xf32>
    %7 = arith.addf %4, %6 : vector<128x32xf32>
    %cst = arith.constant 0.000000e+00 : f32
    %8 = vector.broadcast %cst : f32 to vector<128x32xf32>
    %9 = arith.maximumf %7, %8 : vector<128x32xf32>
    %10 = arith.truncf %9 : vector<128x32xf32> to vector<128x32xbf16>
    %c0_5 = arith.constant 0 : index
    %c0_6 = arith.constant 0 : index
    %11 = vector.load %arg4[%c0_5, %c0_6] : memref<32x64xbf16, #tpu.memory_space<vmem>>, vector<32x64xbf16>
    %cst_7 = arith.constant dense<0.000000e+00> : vector<128x64xf32>
    %12 = tpu.matmul %10, %11, %cst_7 {dimension_numbers = #tpu.dot_dimension_numbers<[1], [0], [0], [1], [0, 0, 1, 1], [], []>} : vector<128x32xbf16>, vector<32x64xbf16>, vector<128x64xf32> -> vector<128x64xf32>
    %13 = arith.truncf %12 : vector<128x64xf32> to vector<128x64xbf16>
    %c0_8 = arith.constant 0 : index
    %c0_9 = arith.constant 0 : index
    %14 = vector.load %arg5[%c0_8, %c0_9] : memref<128x64xbf16, #tpu.memory_space<vmem>>, vector<128x64xbf16>
    tpu.vector_store %arg5[%c0_8, %c0_9], %13 {strides = array<i32>} : memref<128x64xbf16, #tpu.memory_space<vmem>>, vector<128x64xbf16>,
    %cst_10 = arith.constant dense<0.000000e+00> : vector<64xf32>
    %15 = vector.multi_reduction <add>, %12, %cst_10 [0] : vector<128x64xf32> to vector<64xf32>
    %16 = vector.shape_cast %15 : vector<64xf32> to vector<1x64xf32>
    %17 = arith.mulf %12, %12 : vector<128x64xf32>
    %cst_11 = arith.constant dense<0.000000e+00> : vector<64xf32>
    %18 = vector.multi_reduction <add>, %17, %cst_11 [0] : vector<128x64xf32> to vector<64xf32>
    %19 = vector.shape_cast %18 : vector<64xf32> to vector<1x64xf32>
    %20 = tpu.concatenate %16, %19 in 0 : vector<1x64xf32>, vector<1x64xf32> -> vector<2x64xf32>
    %c0_12 = arith.constant 0 : index
    %c0_13 = arith.constant 0 : index
    %c0_14 = arith.constant 0 : index
    %21 = vector.load %arg6[%c0_12, %c0_13, %c0_14] : memref<1x2x64xf32, #tpu.memory_space<vmem>>, vector<1x2x64xf32>
    %22 = vector.shape_cast %21 : vector<1x2x64xf32> to vector<2x64xf32>
    %23 = vector.shape_cast %20 : vector<2x64xf32> to vector<1x2x64xf32>
    tpu.vector_store %arg6[%c0_12, %c0_13, %c0_14], %23 {strides = array<i32>} : memref<1x2x64xf32, #tpu.memory_space<vmem>>, vector<1x2x64xf32>,
    return
  }
  func.func @transform_0(%arg0: i32) -> (i32, i32) {
    %c0_i32 = arith.constant 0 : i32
    %c0_i32_0 = arith.constant 0 : i32
    return %arg0, %c0_i32 : i32, i32
  }
  func.func @transform_1(%arg0: i32) -> (i32, i32) {
    %c0_i32 = arith.constant 0 : i32
    %c0_i32_0 = arith.constant 0 : i32
    %c0_i32_1 = arith.constant 0 : i32
    return %c0_i32, %c0_i32_0 : i32, i32
  }
  func.func @transform_2(%arg0: i32) -> (i32, i32) {
    %c0_i32 = arith.constant 0 : i32
    %c0_i32_0 = arith.constant 0 : i32
    %c0_i32_1 = arith.constant 0 : i32
    return %c0_i32, %c0_i32_0 : i32, i32
  }
  func.func @transform_3(%arg0: i32) -> (i32, i32) {
    %c0_i32 = arith.constant 0 : i32
    %c0_i32_0 = arith.constant 0 : i32
    %c0_i32_1 = arith.constant 0 : i32
    return %c0_i32, %c0_i32_0 : i32, i32
  }
  func.func @transform_4(%arg0: i32) -> (i32, i32) {
    %c0_i32 = arith.constant 0 : i32
    %c0_i32_0 = arith.constant 0 : i32
    return %arg0, %c0_i32 : i32, i32
  }
  func.func @transform_5(%arg0: i32) -> (i32, i32, i32) {
    %c0_i32 = arith.constant 0 : i32
    %c0_i32_0 = arith.constant 0 : i32
    %c0_i32_1 = arith.constant 0 : i32
    return %arg0, %c0_i32, %c0_i32_0 : i32, i32, i32
  }
}

module attributes {stable_mosaic.version = 11 : i64} {
  func.func @_k4_kernel(%arg0: i32, %arg1: memref<128x64xbf16, #tpu.memory_space<vmem>>, %arg2: memref<1x64xf32, #tpu.memory_space<vmem>>, %arg3: memref<1x64xf32, #tpu.memory_space<vmem>>, %arg4: memref<128x64xf32, #tpu.memory_space<vmem>>) attributes {dimension_semantics = [#tpu.dimension_semantics<parallel>], iteration_bounds = array<i64: 1>, scalar_prefetch = 0 : i64, scratch_operands = 0 : i64, tpu.core_type = #tpu.core_type<tc>, window_params = [{transform_indices = @transform_0, window_bounds = array<i64: 128, 64>}, {pipeline_mode = #tpu.pipeline_mode<synchronous>, transform_indices = @transform_1, window_bounds = array<i64: 1, 64>}, {pipeline_mode = #tpu.pipeline_mode<synchronous>, transform_indices = @transform_2, window_bounds = array<i64: 1, 64>}, {transform_indices = @transform_3, window_bounds = array<i64: 128, 64>}]} {
    %c0 = arith.constant 0 : index
    %c0_0 = arith.constant 0 : index
    %0 = vector.load %arg1[%c0, %c0_0] : memref<128x64xbf16, #tpu.memory_space<vmem>>, vector<128x64xbf16>
    %1 = arith.extf %0 : vector<128x64xbf16> to vector<128x64xf32>
    %c0_1 = arith.constant 0 : index
    %c0_2 = arith.constant 0 : index
    %2 = vector.load %arg2[%c0_1, %c0_2] : memref<1x64xf32, #tpu.memory_space<vmem>>, vector<1x64xf32>
    %3 = vector.broadcast %2 : vector<1x64xf32> to vector<128x64xf32>
    %4 = arith.mulf %1, %3 : vector<128x64xf32>
    %c0_3 = arith.constant 0 : index
    %c0_4 = arith.constant 0 : index
    %5 = vector.load %arg3[%c0_3, %c0_4] : memref<1x64xf32, #tpu.memory_space<vmem>>, vector<1x64xf32>
    %6 = vector.broadcast %5 : vector<1x64xf32> to vector<128x64xf32>
    %7 = arith.addf %4, %6 : vector<128x64xf32>
    %cst = arith.constant 0.000000e+00 : f32
    %8 = vector.broadcast %cst : f32 to vector<128x64xf32>
    %9 = arith.maximumf %7, %8 : vector<128x64xf32>
    %c0_5 = arith.constant 0 : index
    %c0_6 = arith.constant 0 : index
    %10 = vector.load %arg4[%c0_5, %c0_6] : memref<128x64xf32, #tpu.memory_space<vmem>>, vector<128x64xf32>
    tpu.vector_store %arg4[%c0_5, %c0_6], %9 {strides = array<i32>} : memref<128x64xf32, #tpu.memory_space<vmem>>, vector<128x64xf32>,
    return
  }
  func.func @transform_0(%arg0: i32) -> (i32, i32) {
    %c0_i32 = arith.constant 0 : i32
    %c0_i32_0 = arith.constant 0 : i32
    return %arg0, %c0_i32 : i32, i32
  }
  func.func @transform_1(%arg0: i32) -> (i32, i32) {
    %c0_i32 = arith.constant 0 : i32
    %c0_i32_0 = arith.constant 0 : i32
    %c0_i32_1 = arith.constant 0 : i32
    return %c0_i32, %c0_i32_0 : i32, i32
  }
  func.func @transform_2(%arg0: i32) -> (i32, i32) {
    %c0_i32 = arith.constant 0 : i32
    %c0_i32_0 = arith.constant 0 : i32
    %c0_i32_1 = arith.constant 0 : i32
    return %c0_i32, %c0_i32_0 : i32, i32
  }
  func.func @transform_3(%arg0: i32) -> (i32, i32) {
    %c0_i32 = arith.constant 0 : i32
    %c0_i32_0 = arith.constant 0 : i32
    return %arg0, %c0_i32 : i32, i32
  }
}

</mosaic_0001>

<bundles_post_ra>
// kernel: tile.27
= control target key start
LH: loop header
LB: loop body
LE: loop exit
PB: predicated region body
PF: predicated region fallthrough
CT: control target
= control target key end

     0   :  { %s22_s0 = inlined_call_operand.vmem [shape: f32[8], index: 0, kind: input, shape index: {}]   ;;  %s23_s1 = inlined_call_operand.vmem [shape: f32[4,8], index: 1, kind: output, shape index: {}]  }
   0x1   :  { %v4_v0 = vld [vmem:[%s22_s0] ss:$0 sm:$0xff] }
   0x2   :  { %5 = vst [vmem:[%s23_s1] sm:$0xf] %v4_v0 }

// kernel: tile.29
= control target key start
LH: loop header
LB: loop body
LE: loop exit
PB: predicated region body
PF: predicated region fallthrough
CT: control target
= control target key end

     0   :  { %vm7_vm0 = vcmask 64512   ;;  %s37_s8 = smov 8   ;;  %s38_s9 = smov 16   ;;  %vm13_vm1 = vcmask 261312   ;;  %vm19_vm2 = vcmask 195712   ;;  %vm25_vm3 = vcmask 130112   ;;  %s55_s0 = inlined_call_operand.vmem [shape: f32[4,8], index: 0, kind: input, shape index: {}]   ;;  %s56_s1 = inlined_call_operand.vmem [shape: f32[1,32], index: 1, kind: output, shape index: {}]  }
   0x1   :  { %v4_v0 = vld [vmem:[%s55_s0] sm:$0xf]  ;;  %s36_s0 = smov 24  }
   0x2   :  { %5 = vst [vmem:[#allocation1] sm:$0xf] %v4_v0 }
   0x9   :  { %v10_v1 = vld [vmem:[#allocation1 + $0x3] sm:$0x1]   ;;  %v22_v2 = vld [vmem:[#allocation1 + $0x1] sm:$0x1]   ;;  %v6_v3 = vld [vmem:[#allocation1] sm:$0x1]  }
   0xa   :  { %11 = vrot.lane.b32.xlu0 %v10_v1, %s36_s0  ;;  %23 = vrot.lane.b32.xlu1 %v22_v2, %s37_s8  ;;  %v16_v4 = vld [vmem:[#allocation1 + $0x2] sm:$0x1]   ;;  %8 = vst.msk [vmem:[#allocation0] sm:$0x1] %vm7_vm0, %v6_v3  }
   0xe   :  { %17 = vrot.lane.b32.xlu0 %v16_v4, %s38_s9 }
  0x7c   :  { %v12_v5 = vpop.permute.xlu0 %11   ;;  %v24_v6 = vpop.permute.xlu1 %23  }
  0x7d   :  { %14 = vst.msk [vmem:[#allocation0] sm:$0x1] %vm13_vm1, %v12_v5  }
  0x80   :  { %v18_v7 = vpop.permute.xlu0 %17  }
  0x81   :  { %20 = vst.msk [vmem:[#allocation0] sm:$0x1] %vm19_vm2, %v18_v7  }
  0x82   :  { %26 = vst.msk [vmem:[#allocation0] sm:$0x1] %vm25_vm3, %v24_v6  }
  0x89   :  { %v30_v8 = vld [vmem:[#allocation0] sm:$0x1] }
  0x8a   :  { %32 = vst [vmem:[%s56_s1] sm:$0x1] %v30_v8 }

// kernel: tile.37
= control target key start
LH: loop header
LB: loop body
LE: loop exit
PB: predicated region body
PF: predicated region fallthrough
CT: control target
= control target key end

     0   :  { %s22_s0 = inlined_call_operand.vmem [shape: f32[16], index: 0, kind: input, shape index: {}]   ;;  %s23_s1 = inlined_call_operand.vmem [shape: f32[4,16], index: 1, kind: output, shape index: {}]  }
   0x1   :  { %v4_v0 = vld [vmem:[%s22_s0] ss:$0 sm:$0xff] }
   0x2   :  { %5 = vst [vmem:[%s23_s1] sm:$0xf] %v4_v0 }

// kernel: tile.39
= control target key start
LH: loop header
LB: loop body
LE: loop exit
PB: predicated region body
PF: predicated region fallthrough
CT: control target
= control target key end

     0   :  { %vm7_vm0 = vcmask 130048   ;;  %s37_s8 = smov 16   ;;  %s38_s9 = smov 32   ;;  %vm13_vm1 = vcmask 523648   ;;  %vm19_vm2 = vcmask 392448   ;;  %vm25_vm3 = vcmask 261248   ;;  %s55_s0 = inlined_call_operand.vmem [shape: f32[4,16], index: 0, kind: input, shape index: {}]   ;;  %s56_s1 = inlined_call_operand.vmem [shape: f32[1,64], index: 1, kind: output, shape index: {}]  }
   0x1   :  { %v4_v0 = vld [vmem:[%s55_s0] sm:$0xf]  ;;  %s36_s0 = smov 48  }
   0x2   :  { %5 = vst [vmem:[#allocation1] sm:$0xf] %v4_v0 }
   0x9   :  { %v10_v1 = vld [vmem:[#allocation1 + $0x3] sm:$0x1]   ;;  %v22_v2 = vld [vmem:[#allocation1 + $0x1] sm:$0x1]   ;;  %v6_v3 = vld [vmem:[#allocation1] sm:$0x1]  }
   0xa   :  { %11 = vrot.lane.b32.xlu0 %v10_v1, %s36_s0  ;;  %23 = vrot.lane.b32.xlu1 %v22_v2, %s37_s8  ;;  %v16_v4 = vld [vmem:[#allocation1 + $0x2] sm:$0x1]   ;;  %8 = vst.msk [vmem:[#allocation0] sm:$0x1] %vm7_vm0, %v6_v3  }
   0xe   :  { %17 = vrot.lane.b32.xlu0 %v16_v4, %s38_s9 }
  0x7c   :  { %v12_v5 = vpop.permute.xlu0 %11   ;;  %v24_v6 = vpop.permute.xlu1 %23  }
  0x7d   :  { %14 = vst.msk [vmem:[#allocation0] sm:$0x1] %vm13_vm1, %v12_v5  }
  0x80   :  { %v18_v7 = vpop.permute.xlu0 %17  }
  0x81   :  { %20 = vst.msk [vmem:[#allocation0] sm:$0x1] %vm19_vm2, %v18_v7  }
  0x82   :  { %26 = vst.msk [vmem:[#allocation0] sm:$0x1] %vm25_vm3, %v24_v6  }
  0x89   :  { %v30_v8 = vld [vmem:[#allocation0] sm:$0x1] }
  0x8a   :  { %32 = vst [vmem:[%s56_s1] sm:$0x1] %v30_v8 }

// kernel: decoder_block_forward.4
= control target key start
LH: loop header
LB: loop body
LE: loop exit
PB: predicated region body
PF: predicated region fallthrough
CT: control target
= control target key end

     0   :  { %s712_s12 = smov 0   ;;  %s714_s13 = smov 0   ;;  %s796_s0 = inlined_call_operand.vmem [shape: f32[2,32,64], index: 0, kind: input, shape index: {}]   ;;  %s797_s1 = inlined_call_operand.vmem [shape: bf16[32,8], index: 1, kind: input, shape index: {}]   ;;  %s798_s2 = inlined_call_operand.vmem [shape: bf16[2,64,8], index: 2, kind: output, shape index: {0}]   ;;  %s799_s3 = inlined_call_operand.vmem [shape: f32[2,1,2,8], index: 3, kind: output, shape index: {1}]  }
   0x1   :  { %s716_s14 = smov 0  }
   0x2 LB: > { %s26_s15 = sadd.s32 1, %s686_s13  ;;  %p587_p0 = scmp.ge.s32.totalorder %s690_s14, 1  ;;  %s690_s14 = sphi %s716_s14, %s14_s14   ;;  %s686_s13 = sphi %s714_s13, %s801_s13   ;;  %s682_s12 = sphi %s712_s12, %s800_s12  }
   0x3   : > { %p28_p1 = scmp.ge.s32.totalorder %s26_s15, 2  ;;  %p161_p2 = scmp.lt.s32.totalorder %s690_s14, 3 }
   0x5   : > { %s803_s15 = smov (%p28_p1, %s26_s15), 0  ;;  %p162_p3 = pnand %p587_p0, %p161_p2 }
   0x6   : > { %p199_p4 = scmp.lt.s32.totalorder (!%p162_p3), %s682_s12, 1  ;;  %v666_v3 = vld [vmem:[%s797_s1] sm:$0xff] (!%p162_p3)   ;;  %v667_v4 = vld [vmem:[%s797_s1 + $0x8] sm:$0xff] (!%p162_p3)   ;;  %vm281_vm0 = vcmask (!%p162_p3), 261120   ;;  %vm391_vm1 = vcmask (!%p162_p3), 60416   ;;  %vm400_vm2 = vcmask (!%p162_p3), 64512  }
   0x7   : > { %165 = sbr.rel (%p162_p3) target bundleno = 415 (0x19f), region = 28  ;;  %625 = vmatprep.subr.bf16.mxu0 (!%p162_p3), %v666_v3  ;;  %637 = vmatprep.subr.bf16.mxu1 (!%p162_p3), %v666_v3  ;;  %vm451_vm3 = vcmask (!%p162_p3), 1040384   ;;  %vm453_vm4 = vcmask (!%p162_p3), 58368  }
   0x8   : > { %626 = vmatpush3.bf16.msra.mxu0 (!%p162_p3), %v666_v3  ;;  %639 = vmatpush3.bf16.msra.mxu1 (!%p162_p3), %v666_v3 }
   0x9   : > { %627 = vmatprep.subr.bf16.mxu0 (!%p162_p3), %v667_v4  ;;  %638 = vmatprep.subr.bf16.mxu1 (!%p162_p3), %v667_v4 }
   0xc   : > { %628 = vmatpush3.bf16.msra.mxu0 (!%p162_p3), %v667_v4  ;;  %640 = vmatpush3.bf16.msra.mxu1 (!%p162_p3), %v667_v4 }
   0xe   : > { %s805_s12 = smov (!%p199_p4, %s682_s12), 1 }
   0xf   : > { %s609_s16 = sshll.u32 %s805_s12, 5  ;;  %s592_s27 = sshll.u32 %s805_s12, 1 }
  0x10   : > { %s206_s19 = scalar_lea.vmem %s796_s0, %s609_s16  ;;  %s749_s26 = scalar_lea.vmem %s798_s2, %s609_s16 }
  0x11   : > { %v225_v0 = vld [vmem:[%s206_s19] sm:$0xff]  ;;  %v226_v1 = vld [vmem:[%s206_s19 + $0x8] sm:$0xff]  ;;  %v227_v2 = vld [vmem:[%s206_s19 + $0x10] sm:$0xff]  ;;  %s223_s30 = scalar_lea.vmem %s799_s3, %s592_s27 }
  0x12   : > { %229 = vxpose.xlu0.b32.start [1/4] (short) (narrow) %v225_v0, 64  ;;  %v228_v5 = vld [vmem:[%s206_s19 + $0x18] sm:$0xff] }
  0x16   : > { %230 = vxpose.xlu0.b32.cont [2/4] (short) (narrow) %v226_v1, 64 }
  0x1a   : > { %231 = vxpose.xlu0.b32.cont [3/4] (short) (narrow) %v227_v2, 64 }
  0x1e   : > { %232 = vxpose.xlu0.b32.end [4/4] (short) (narrow) %v228_v5, 64 }
  0x92   : > { %v245_v6 = vpop.trf.xlu0 }
  0x96   : > { %v246_v7 = vpop.trf.xlu0 }
  0x97   : > { %v261_v8 = vpack.c.bf16 %v246_v7, %v245_v6 }
  0x99   : > { %629 = vmatprep.mubr.msk.bf16.mxu0 %vm281_vm0, %v261_v8 }
  0x9a   : > { %v247_v9 = vpop.trf.xlu0 }
  0x9e   : > { %v248_v10 = vpop.trf.xlu0 }
  0x9f   : > { %v262_v11 = vpack.c.bf16 %v248_v10, %v247_v9 }
  0xa1   : > { %630 = vmatmul.mubr.msk.bf16.vlgmr.msra.gmra.mrb[0].mxu0 %vm281_vm0, %v262_v11 }
  0xa2   : > { %v249_v12 = vpop.trf.xlu0 }
  0xa6   : > { %v250_v13 = vpop.trf.xlu0 }
  0xa7   : > { %v263_v14 = vpack.c.bf16 %v250_v13, %v249_v12 }
  0xa9   : > { %633 = vmatprep.mubr.msk.bf16.mxu1 %vm281_vm0, %v263_v14 }
  0xaa   : > { %v251_v15 = vpop.trf.xlu0 }
  0xae   : > { %v252_v16 = vpop.trf.xlu0 }
  0xaf   : > { %v264_v17 = vpack.c.bf16 %v252_v16, %v251_v15 }
  0xb1   : > { %634 = vmatmul.mubr.msk.bf16.vlgmr.msra.gmra.mrb[0].mxu1 %vm281_vm0, %v264_v17 }
 0x174   : > { %v631_v18 = vpop.f32.mrb[0].mxu0 }
 0x175   : > { %v613_v19 = vpack.c.bf16 %v631_v18, %v631_v18  ;;  %v328_v20 = vpop.f32.mrb[1].mxu0  ;;  %v424_v24 = vmul.f32 %v631_v18, %v631_v18  ;;  %v404_v32 = vsel %vm400_vm2, %v631_v18, 0.0 }
 0x176   : > { %v611_v21 = vpack.c.bf16 %v328_v20, %v328_v20  ;;  %v422_v22 = vmul.f32 %v328_v20, %v328_v20  ;;  %v632_v23 = vpop.f32.mrb[2].mxu0  ;;  %v401_v27 = vsel %vm400_vm2, %v328_v20, 0.0 }
 0x177   : > { %394 = vst.msk [vmem:[%s749_s26 + $0x8] sm:$0xf] %vm391_vm1, %v613_v19  ;;  %v614_v25 = vpack.c.bf16 %v632_v23, %v632_v23  ;;  %v331_v26 = vpop.f32.mrb[3].mxu0  ;;  %v425_v34 = vmul.f32 %v632_v23, %v632_v23  ;;  %v433_v38 = vsel %vm400_vm2, %v424_v24, 0.0  ;;  %v406_v39 = vsel %vm400_vm2, %v632_v23, 0.0 }
 0x178   : > { %392 = vst.msk [vmem:[%s749_s26] sm:$0xf] %vm391_vm1, %v611_v21  ;;  %v612_v28 = vpack.c.bf16 %v331_v26, %v331_v26  ;;  %v402_v29 = vsel %vm400_vm2, %v331_v26, 0.0  ;;  %v423_v30 = vmul.f32 %v331_v26, %v331_v26  ;;  %v430_v33 = vsel %vm400_vm2, %v422_v22, 0.0 }
 0x179   : > { %395 = vst.msk [vmem:[%s749_s26 + $0xc] sm:$0xf] %vm391_vm1, %v614_v25  ;;  %v403_v31 = vadd.f32 %v402_v29, %v401_v27  ;;  %v435_v42 = vsel %vm400_vm2, %v425_v34, 0.0 }
 0x17a   : > { %393 = vst.msk [vmem:[%s749_s26 + $0x4] sm:$0xf] %vm391_vm1, %v612_v28  ;;  %v431_v35 = vsel %vm400_vm2, %v423_v30, 0.0 }
 0x17b   : > { %v405_v36 = vadd.f32 %v404_v32, %v403_v31  ;;  %v432_v37 = vadd.f32 %v431_v35, %v430_v33 }
 0x17d   : > { %v434_v40 = vadd.f32 %v433_v38, %v432_v37  ;;  %v407_v41 = vadd.f32 %v406_v39, %v405_v36 }
 0x17f   : > { %v436_v43 = vadd.f32 %v435_v42, %v434_v40 }
 0x184   : > { %v635_v44 = vpop.f32.mrb[0].mxu1 }
 0x185   : > { %v617_v45 = vpack.c.bf16 %v635_v44, %v635_v44  ;;  %v344_v46 = vpop.f32.mrb[1].mxu1  ;;  %v428_v57 = vmul.f32 %v635_v44, %v635_v44  ;;  %v412_v61 = vsel %vm400_vm2, %v635_v44, 0.0 }
 0x186   : > { %v615_v47 = vpack.c.bf16 %v344_v46, %v344_v46  ;;  %v408_v48 = vsel %vm400_vm2, %v344_v46, 0.0  ;;  %v426_v49 = vmul.f32 %v344_v46, %v344_v46  ;;  %v636_v50 = vpop.f32.mrb[2].mxu1 }
 0x187   : > { %398 = vst.msk [vmem:[%s749_s26 + $0x18] sm:$0xf] %vm391_vm1, %v617_v45  ;;  %v409_v51 = vadd.f32 %v408_v48, %v407_v41  ;;  %v618_v52 = vpack.c.bf16 %v636_v50, %v636_v50  ;;  %v347_v53 = vpop.f32.mrb[3].mxu1  ;;  %v429_v62 = vmul.f32 %v636_v50, %v636_v50  ;;  %v414_v1 = vsel %vm400_vm2, %v636_v50, 0.0 }
 0x188   : > { %396 = vst.msk [vmem:[%s749_s26 + $0x10] sm:$0xf] %vm391_vm1, %v615_v47  ;;  %v437_v54 = vsel %vm400_vm2, %v426_v49, 0.0  ;;  %v616_v55 = vpack.c.bf16 %v347_v53, %v347_v53  ;;  %v410_v56 = vsel %vm400_vm2, %v347_v53, 0.0  ;;  %v427_v60 = vmul.f32 %v347_v53, %v347_v53 }
 0x189   : > { %v438_v58 = vadd.f32 %v437_v54, %v436_v43  ;;  %399 = vst.msk [vmem:[%s749_s26 + $0x1c] sm:$0xf] %vm391_vm1, %v618_v52  ;;  %v411_v59 = vadd.f32 %v410_v56, %v409_v51  ;;  %v441_v3 = vsel %vm400_vm2, %v428_v57, 0.0  ;;  %v443_v6 = vsel %vm400_vm2, %v429_v62, 0.0 }
 0x18a   : > { %397 = vst.msk [vmem:[%s749_s26 + $0x14] sm:$0xf] %vm391_vm1, %v616_v55  ;;  %v439_v0 = vsel %vm400_vm2, %v427_v60, 0.0 }
 0x18b   : > { %v413_v63 = vadd.f32 %v412_v61, %v411_v59  ;;  %v440_v2 = vadd.f32 %v439_v0, %v438_v58 }
 0x18d   : > { %v415_v4 = vadd.f32 %v414_v1, %v413_v63  ;;  %v442_v5 = vadd.f32 %v441_v3, %v440_v2 }
 0x18f   : > { %v416_v7 = vrot.slane %v415_v4, 4  ;;  %v444_v8 = vadd.f32 %v443_v6, %v442_v5 }
 0x191   : > { %v417_v9 = vadd.f32 %v416_v7, %v415_v4  ;;  %v445_v10 = vrot.slane %v444_v8, 4 }
 0x193   : > { %v418_v11 = vrot.slane %v417_v9, 2  ;;  %v446_v12 = vadd.f32 %v445_v10, %v444_v8 }
 0x195   : > { %v419_v13 = vadd.f32 %v418_v11, %v417_v9  ;;  %v447_v14 = vrot.slane %v446_v12, 2 }
 0x197   : > { %v420_v15 = vrot.slane %v419_v13, 1  ;;  %v448_v16 = vadd.f32 %v447_v14, %v446_v12 }
 0x199   : > { %v449_v17 = vrot.slane %v448_v16, 1  ;;  %v421_v18 = vadd.f32 %v420_v15, %v419_v13 }
 0x19b   : > { %v450_v19 = vadd.f32 %v449_v17, %v448_v16 }
 0x19d   : > { %v452_v20 = vsel %vm451_vm3, %v421_v18, %v450_v19 }
 0x19e   : > { %454 = vst.msk [vmem:[%s223_s30] sm:$0x3] %vm453_vm4, %v452_v20 }
 0x19f PF: > { %s14_s14 = sadd.s32 1, %s690_s14   ;;  %s800_s12 = smov %s686_s13 }
 0x1a0   : > { %p11_p5 = scmp.ge.s32.totalorder %s14_s14, 4   ;;  %s801_s13 = smov %s803_s15 }
 0x1a2   :  { %13 = sbr.rel (!%p11_p5) target bundleno = 2 (0x2), region = 70 }

// kernel: decoder_block_forward.5
= control target key start
LH: loop header
LB: loop body
LE: loop exit
PB: predicated region body
PF: predicated region fallthrough
CT: control target
= control target key end

     0   :  { %s1283_s21 = smov 0   ;;  %s1285_s22 = smov 0   ;;  %s1416_s0 = inlined_call_operand.vmem [shape: bf16[2,8,8,8], index: 0, kind: input, shape index: {}, may-alias: {0,1}]   ;;  %s1417_s1 = inlined_call_operand.vmem [shape: bf16[2,8,8,8], index: 1, kind: input, shape index: {}, may-alias: {0,1}]   ;;  %s1418_s2 = inlined_call_operand.vmem [shape: f32[1,8], index: 2, kind: input, shape index: {}]   ;;  %s1419_s3 = inlined_call_operand.vmem [shape: f32[1,8], index: 3, kind: input, shape index: {}]   ;;  %s1420_s4 = inlined_call_operand.vmem [shape: bf16[32,32], index: 4, kind: input, shape index: {}]   ;;  %s1421_s5 = inlined_call_operand.vmem [shape: bf16[2,8,8,32], index: 5, kind: output, shape index: {0}]   ;;  %s1422_s6 = inlined_call_operand.vmem [shape: f32[2,1,2,32], index: 6, kind: output, shape index: {1}]  }
   0x1   :  { %s1287_s1 = smov 0  }
   0x2 LB: > { %s29_s23 = sadd.s32 1, %s1241_s22  ;;  %p1059_p0 = scmp.ge.s32.totalorder %s1245_s1, 1  ;;  %s1245_s1 = sphi %s1287_s1, %s17_s1   ;;  %s1241_s22 = sphi %s1285_s22, %s1424_s22   ;;  %s1237_s21 = sphi %s1283_s21, %s1423_s21  }
   0x3   : > { %p31_p1 = scmp.ge.s32.totalorder %s29_s23, 2  ;;  %p269_p2 = scmp.lt.s32.totalorder %s1245_s1, 3 }
   0x5   : > { %s1426_s23 = smov (%p31_p1, %s29_s23), 0  ;;  %p270_p3 = pnand %p1059_p0, %p269_p2 }
   0x6   : > { %vm502_vm0 = vcmask (!%p270_p3), 1043456   ;;  %v655_v0 = vld [vmem:[%s1420_s4 + $0x8] sm:$0xf] (!%p270_p3)  ;;  %v488_v1 = vld [vmem:[%s1420_s4 + $0x4] sm:$0xf] (!%p270_p3)  ;;  %p327_p4 = scmp.lt.s32.totalorder (!%p270_p3), %s1237_s21, 1 }
   0x7   : > { %273 = sbr.rel (%p270_p3) target bundleno = 297 (0x129), region = 40  ;;  %1196 = vmatprep.subr.msk.bf16.mxu0 (!%p270_p3), %vm502_vm0, %v655_v0  ;;  %v669_v2 = vsel (!%p270_p3), %vm502_vm0, %v655_v0, 0  ;;  %1194 = vmatprep.subr.msk.bf16.mxu1 (!%p270_p3), %vm502_vm0, %v488_v1  ;;  %v504_v3 = vsel (!%p270_p3), %vm502_vm0, %v488_v1, 0  ;;  %v1316_v4 = vld [vmem:[%s1420_s4] sm:$0xf] (!%p270_p3)  ;;  %vm489_vm1 = vcmask (!%p270_p3), 64512  }
   0x8   : > { %1151 = vmatpush3.bf16.msra.mxu0 (!%p270_p3), %v669_v2  ;;  %1131 = vmatpush3.bf16.msra.mxu1 (!%p270_p3), %v504_v3  ;;  %v748_v5 = vld [vmem:[%s1420_s4 + $0xc] sm:$0xf] (!%p270_p3)  ;;  %v1067_v6 = vld [vmem:[%s1418_s2] ss:$0 sm:$0xff] (!%p270_p3)  ;;  %vm469_vm2 = vcmask (!%p270_p3), 1046528   ;;  %v584_v61 = vsel (!%p270_p3), %vm502_vm0, %v1316_v4, 0 }
   0x9   : > { %1195 = vmatprep.subr.msk.bf16.mxu1 (!%p270_p3), %vm502_vm0, %v1316_v4  ;;  %1197 = vmatprep.subr.msk.bf16.mxu0 (!%p270_p3), %vm502_vm0, %v748_v5  ;;  %v1068_v15 = vld [vmem:[%s1419_s3] ss:$0 sm:$0xff] (!%p270_p3)  ;;  %v762_v41 = vsel (!%p270_p3), %vm502_vm0, %v748_v5, 0  ;;  %v1247_v2 = vmov (!%p270_p3), 0.0   ;;  %vm845_vm3 = vcmask (!%p270_p3), 257024   ;;  %vm854_vm4 = vcmask (!%p270_p3), 261120  }
   0xa   : > { %vm905_vm5 = vcmask (!%p270_p3), 1040384   ;;  %vm907_vm6 = vcmask (!%p270_p3), 254976  }
   0xe   : > { %s1428_s21 = smov (!%p327_p4, %s1237_s21), 1 }
   0xf   : > { %s1087_s8 = sshll.u32 %s1428_s21, 5  ;;  %s1066_s19 = sshll.u32 %s1428_s21, 1 }
  0x10   : > { %s334_s11 = scalar_lea.vmem %s1416_s0, %s1087_s8  ;;  %s1369_s18 = scalar_lea.vmem %s1421_s5, %s1087_s8 }
  0x11   : > { %v1092_v7 = vld [vmem:[%s334_s11] sm:$0xff]   ;;  %v1107_v8 = vld [vmem:[%s334_s11 + $0x8] sm:$0xff]   ;;  %v1108_v9 = vld [vmem:[%s334_s11 + $0x10] sm:$0xff]   ;;  %s368_s25 = scalar_lea.vmem %s1422_s6, %s1066_s19 }
  0x12   : > { %v1094_v10 = vunpack.c.h.bf16 %v1092_v7  ;;  %v1097_v11 = vunpack.c.l.bf16 %v1107_v8  ;;  %v1098_v12 = vunpack.c.h.bf16 %v1107_v8  ;;  %v1101_v13 = vunpack.c.l.bf16 %v1108_v9  ;;  %v1109_v14 = vld [vmem:[%s334_s11 + $0x18] sm:$0xff]  }
  0x13   : > { %v1093_v16 = vunpack.c.l.bf16 %v1092_v7  ;;  %v1102_v17 = vunpack.c.h.bf16 %v1108_v9  ;;  %v1105_v18 = vunpack.c.l.bf16 %v1109_v14  ;;  %v1106_v19 = vunpack.c.h.bf16 %v1109_v14 }
  0x14   : > { %v397_v20 = vmul.f32 %v1094_v10, %v1067_v6  ;;  %v398_v21 = vmul.f32 %v1097_v11, %v1067_v6  ;;  %v399_v22 = vmul.f32 %v1098_v12, %v1067_v6  ;;  %v400_v23 = vmul.f32 %v1101_v13, %v1067_v6 }
  0x15   : > { %v396_v24 = vmul.f32 %v1093_v16, %v1067_v6  ;;  %v401_v25 = vmul.f32 %v1102_v17, %v1067_v6  ;;  %v402_v26 = vmul.f32 %v1105_v18, %v1067_v6  ;;  %v403_v27 = vmul.f32 %v1106_v19, %v1067_v6 }
  0x16   : > { %v412_v28 = vadd.f32 %v1068_v15, %v397_v20  ;;  %v413_v29 = vadd.f32 %v1068_v15, %v398_v21  ;;  %v414_v30 = vadd.f32 %v1068_v15, %v399_v22  ;;  %v415_v31 = vadd.f32 %v1068_v15, %v400_v23 }
  0x17   : > { %v411_v32 = vadd.f32 %v1068_v15, %v396_v24  ;;  %v416_v33 = vadd.f32 %v1068_v15, %v401_v25  ;;  %v417_v34 = vadd.f32 %v1068_v15, %v402_v26  ;;  %v418_v35 = vadd.f32 %v1068_v15, %v403_v27 }
  0x18   : > { %v421_v36 = vmax.f32 %v412_v28, 0.0  ;;  %v422_v37 = vmax.f32 %v413_v29, 0.0  ;;  %v423_v38 = vmax.f32 %v414_v30, 0.0  ;;  %v424_v39 = vmax.f32 %v415_v31, 0.0 }
  0x19   : > { %v420_v40 = vmax.f32 %v411_v32, 0.0  ;;  %v425_v42 = vmax.f32 %v416_v33, 0.0  ;;  %v426_v43 = vmax.f32 %v417_v34, 0.0  ;;  %v427_v47 = vmax.f32 %v418_v35, 0.0 }
  0x1a   : > { %v651_v44 = vpack.c.bf16 %v422_v37, %v421_v36  ;;  %v652_v45 = vpack.c.bf16 %v424_v39, %v423_v38  ;;  %v452_v46 = vrot.slane %v421_v36, 1  ;;  %v453_v49 = vrot.slane %v422_v37, 1 }
  0x1b   : > { %v451_v48 = vrot.slane %v420_v40, 1  ;;  %v454_v50 = vrot.slane %v423_v38, 1  ;;  %v455_v51 = vrot.slane %v424_v39, 1  ;;  %v653_v53 = vpack.c.bf16 %v426_v43, %v425_v42 }
  0x1c   : > { %1152 = vmatprep.mubr.msk.bf16.mxu0 %vm489_vm1, %v651_v44  ;;  %v471_v52 = vsel %vm469_vm2, %v452_v46, 0.0  ;;  %v456_v54 = vrot.slane %v425_v42, 1  ;;  %v472_v56 = vsel %vm469_vm2, %v453_v49, 0.0  ;;  %v457_v63 = vrot.slane %v426_v43, 1 }
  0x1d   : > { %1153 = vmatmul.mubr.msk.bf16.vlgmr.msra.gmra.mrb[0].mxu0 %vm489_vm1, %v652_v45  ;;  %v470_v55 = vsel %vm469_vm2, %v451_v48, 0.0  ;;  %v473_v57 = vsel %vm469_vm2, %v454_v50, 0.0  ;;  %v474_v58 = vsel %vm469_vm2, %v455_v51, 0.0  ;;  %v458_v0 = vrot.slane %v427_v47, 1 }
  0x1e   : > { %v484_v59 = vpack.c.bf16 %v471_v52, %v470_v55  ;;  %v485_v60 = vpack.c.bf16 %v473_v57, %v472_v56  ;;  %1161 = vmatpush3.bf16.msra.mxu0 %v762_v41  ;;  %1156 = vmatprep.mubr.msk.bf16.mxu0 %vm489_vm1, %v653_v53  ;;  %v475_v62 = vsel %vm469_vm2, %v456_v54, 0.0  ;;  %v654_v3 = vpack.c.bf16 %v1247_v2, %v427_v47 }
  0x1f   : > { %v486_v1 = vpack.c.bf16 %v475_v62, %v474_v58  ;;  %v744_v5 = vpack.c.bf16 %v472_v56, %v471_v52  ;;  %v476_v6 = vsel %vm469_vm2, %v457_v63, 0.0  ;;  %v477_v4 = vsel %vm469_vm2, %v458_v0, 0.0 }
  0x20   : > { %1132 = vmatprep.mubr.msk.bf16.mxu1 %vm489_vm1, %v484_v59  ;;  %v487_v7 = vpack.c.bf16 %v477_v4, %v476_v6  ;;  %v479_v8 = vpack.c.bf16 %v421_v36, %v420_v40  ;;  %v745_v9 = vpack.c.bf16 %v474_v58, %v473_v57  ;;  %v459_v10 = vrot.slane %v1247_v2, 1 }
  0x21   : > { %1133 = vmatmul.mubr.msk.bf16.vlgmr.msra.gmra.mrb[0].mxu1 %vm489_vm1, %v485_v60  ;;  %v746_v11 = vpack.c.bf16 %v476_v6, %v475_v62  ;;  %v480_v12 = vpack.c.bf16 %v423_v38, %v422_v37  ;;  %v481_v14 = vpack.c.bf16 %v425_v42, %v424_v39  ;;  %v482_v16 = vpack.c.bf16 %v427_v47, %v426_v43 }
  0x22   : > { %1141 = vmatpush3.bf16.msra.mxu1 %v584_v61  ;;  %1136 = vmatprep.mubr.msk.bf16.mxu1 %vm489_vm1, %v486_v1  ;;  %v478_v13 = vsel %vm469_vm2, %v459_v10, 0.0 }
  0x23   : > { %v747_v15 = vpack.c.bf16 %v478_v13, %v477_v4 }
  0x25   : > { %1157 = vmatmul.mubr.msk.bf16.gmra.mrb[4].mxu0 %vm489_vm1, %v654_v3 }
  0x26   : > { %1162 = vmatprep.mubr.msk.bf16.mxu0 %vm489_vm1, %v744_v5 }
  0x29   : > { %1137 = vmatmul.mubr.msk.bf16.gmra.mrb[4].mxu1 %vm489_vm1, %v487_v7 }
  0x2a   : > { %1142 = vmatprep.mubr.msk.bf16.mxu1 %vm489_vm1, %v479_v8 }
  0x2d   : > { %1163 = vmatmul.mubr.msk.bf16.vlgmr.msra.gmra.mrb[0].mxu0 %vm489_vm1, %v745_v9 }
  0x2e   : > { %1166 = vmatprep.mubr.msk.bf16.mxu0 %vm489_vm1, %v746_v11 }
  0x31   : > { %1143 = vmatmul.mubr.msk.bf16.vlgmr.msra.gmra.mrb[0].mxu1 %vm489_vm1, %v480_v12 }
  0x32   : > { %1146 = vmatprep.mubr.msk.bf16.mxu1 %vm489_vm1, %v481_v14 }
  0x35   : > { %1167 = vmatmul.mubr.msk.bf16.gmra.mrb[4].mxu0 %vm489_vm1, %v747_v15 }
  0x39   : > { %1147 = vmatmul.mubr.msk.bf16.gmra.mrb[4].mxu1 %vm489_vm1, %v482_v16 }
 0x100   : > { %v1164_v17 = vpop.f32.mrb[0].mxu0 }
 0x101   : > { %v798_v18 = vpop.f32.mrb[1].mxu0 }
 0x102   : > { %v1165_v19 = vpop.f32.mrb[2].mxu0 }
 0x103   : > { %v801_v20 = vpop.f32.mrb[3].mxu0 }
 0x104   : > { %v1144_v21 = vpop.f32.mrb[0].mxu1 }
 0x105   : > { %v1170_v22 = vadd.f32 %v1164_v17, %v1144_v21  ;;  %v620_v23 = vpop.f32.mrb[1].mxu1 }
 0x106   : > { %v1171_v24 = vadd.f32 %v798_v18, %v620_v23  ;;  %v1145_v25 = vpop.f32.mrb[2].mxu1 }
 0x107   : > { %v839_v26 = vpack.c.bf16 %v1170_v22, %v1170_v22  ;;  %v1172_v27 = vadd.f32 %v1165_v19, %v1145_v25  ;;  %v623_v28 = vpop.f32.mrb[3].mxu1  ;;  %v878_v33 = vmul.f32 %v1170_v22, %v1170_v22  ;;  %v858_v44 = vsel %vm854_vm4, %v1170_v22, 0.0 }
 0x108   : > { %v837_v29 = vpack.c.bf16 %v1171_v24, %v1171_v24  ;;  %v876_v30 = vmul.f32 %v1171_v24, %v1171_v24  ;;  %v1173_v31 = vadd.f32 %v801_v20, %v623_v28  ;;  %v1168_v32 = vpop.f32.mrb[4].mxu0  ;;  %v855_v36 = vsel %vm854_vm4, %v1171_v24, 0.0 }
 0x109   : > { %848 = vst.msk [vmem:[%s1369_s18 + $0x8] sm:$0xf] %vm845_vm3, %v839_v26  ;;  %v840_v34 = vpack.c.bf16 %v1172_v27, %v1172_v27  ;;  %v814_v35 = vpop.f32.mrb[5].mxu0  ;;  %v879_v41 = vmul.f32 %v1172_v27, %v1172_v27  ;;  %v887_v52 = vsel %vm854_vm4, %v878_v33, 0.0  ;;  %v860_v55 = vsel %vm854_vm4, %v1172_v27, 0.0 }
 0x10a   : > { %846 = vst.msk [vmem:[%s1369_s18] sm:$0xf] %vm845_vm3, %v837_v29  ;;  %v838_v37 = vpack.c.bf16 %v1173_v31, %v1173_v31  ;;  %v856_v38 = vsel %vm854_vm4, %v1173_v31, 0.0  ;;  %v877_v39 = vmul.f32 %v1173_v31, %v1173_v31  ;;  %v1169_v40 = vpop.f32.mrb[6].mxu0  ;;  %v884_v45 = vsel %vm854_vm4, %v876_v30, 0.0 }
 0x10b   : > { %849 = vst.msk [vmem:[%s1369_s18 + $0xc] sm:$0xf] %vm845_vm3, %v840_v34  ;;  %v857_v42 = vadd.f32 %v856_v38, %v855_v36  ;;  %v817_v43 = vpop.f32.mrb[7].mxu0  ;;  %v889_v56 = vsel %vm854_vm4, %v879_v41, 0.0 }
 0x10c   : > { %847 = vst.msk [vmem:[%s1369_s18 + $0x4] sm:$0xf] %vm845_vm3, %v838_v37  ;;  %v885_v46 = vsel %vm854_vm4, %v877_v39, 0.0  ;;  %v1148_v47 = vpop.f32.mrb[4].mxu1 }
 0x10d   : > { %v859_v48 = vadd.f32 %v858_v44, %v857_v42  ;;  %v886_v49 = vadd.f32 %v885_v46, %v884_v45  ;;  %v1174_v50 = vadd.f32 %v1168_v32, %v1148_v47  ;;  %v636_v51 = vpop.f32.mrb[5].mxu1 }
 0x10e   : > { %v1175_v53 = vadd.f32 %v814_v35, %v636_v51  ;;  %v1149_v54 = vpop.f32.mrb[6].mxu1 }
 0x10f   : > { %v888_v57 = vadd.f32 %v887_v52, %v886_v49  ;;  %v843_v58 = vpack.c.bf16 %v1174_v50, %v1174_v50  ;;  %v639_v59 = vpop.f32.mrb[7].mxu1  ;;  %v861_v61 = vadd.f32 %v860_v55, %v859_v48  ;;  %v1176_v1 = vadd.f32 %v1169_v40, %v1149_v54 }
 0x110   : > { %v841_v60 = vpack.c.bf16 %v1175_v53, %v1175_v53  ;;  %v862_v62 = vsel %vm854_vm4, %v1175_v53, 0.0  ;;  %v880_v63 = vmul.f32 %v1175_v53, %v1175_v53  ;;  %v1177_v2 = vadd.f32 %v817_v43, %v639_v59 }
 0x111   : > { %852 = vst.msk [vmem:[%s1369_s18 + $0x18] sm:$0xf] %vm845_vm3, %v843_v58  ;;  %v890_v0 = vadd.f32 %v889_v56, %v888_v57  ;;  %v863_v3 = vadd.f32 %v862_v62, %v861_v61  ;;  %v844_v4 = vpack.c.bf16 %v1176_v1, %v1176_v1  ;;  %v882_v7 = vmul.f32 %v1174_v50, %v1174_v50 }
 0x112   : > { %850 = vst.msk [vmem:[%s1369_s18 + $0x10] sm:$0xf] %vm845_vm3, %v841_v60  ;;  %v891_v5 = vsel %vm854_vm4, %v880_v63, 0.0  ;;  %v842_v8 = vpack.c.bf16 %v1177_v2, %v1177_v2  ;;  %v864_v9 = vsel %vm854_vm4, %v1177_v2, 0.0  ;;  %v881_v10 = vmul.f32 %v1177_v2, %v1177_v2 }
 0x113   : > { %v892_v6 = vadd.f32 %v891_v5, %v890_v0  ;;  %853 = vst.msk [vmem:[%s1369_s18 + $0x1c] sm:$0xf] %vm845_vm3, %v844_v4  ;;  %v865_v11 = vadd.f32 %v864_v9, %v863_v3  ;;  %v866_v12 = vsel %vm854_vm4, %v1174_v50, 0.0  ;;  %v883_v13 = vmul.f32 %v1176_v1, %v1176_v1 }
 0x114   : > { %851 = vst.msk [vmem:[%s1369_s18 + $0x14] sm:$0xf] %vm845_vm3, %v842_v8  ;;  %v893_v14 = vsel %vm854_vm4, %v881_v10, 0.0  ;;  %v895_v17 = vsel %vm854_vm4, %v882_v7, 0.0  ;;  %v868_v18 = vsel %vm854_vm4, %v1176_v1, 0.0 }
 0x115   : > { %v867_v15 = vadd.f32 %v866_v12, %v865_v11  ;;  %v894_v16 = vadd.f32 %v893_v14, %v892_v6  ;;  %v897_v21 = vsel %vm854_vm4, %v883_v13, 0.0 }
 0x117   : > { %v869_v19 = vadd.f32 %v868_v18, %v867_v15  ;;  %v896_v20 = vadd.f32 %v895_v17, %v894_v16 }
 0x119   : > { %v870_v22 = vrot.slane %v869_v19, 4  ;;  %v898_v23 = vadd.f32 %v897_v21, %v896_v20 }
 0x11b   : > { %v871_v24 = vadd.f32 %v870_v22, %v869_v19  ;;  %v899_v25 = vrot.slane %v898_v23, 4 }
 0x11d   : > { %v872_v26 = vrot.slane %v871_v24, 2  ;;  %v900_v27 = vadd.f32 %v899_v25, %v898_v23 }
 0x11f   : > { %v873_v28 = vadd.f32 %v872_v26, %v871_v24  ;;  %v901_v29 = vrot.slane %v900_v27, 2 }
 0x121   : > { %v874_v30 = vrot.slane %v873_v28, 1  ;;  %v902_v31 = vadd.f32 %v901_v29, %v900_v27 }
 0x123   : > { %v903_v32 = vrot.slane %v902_v31, 1  ;;  %v875_v33 = vadd.f32 %v874_v30, %v873_v28 }
 0x125   : > { %v904_v34 = vadd.f32 %v903_v32, %v902_v31 }
 0x127   : > { %v906_v35 = vsel %vm905_vm5, %v875_v33, %v904_v34 }
 0x128   : > { %908 = vst.msk [vmem:[%s368_s25] sm:$0x3] %vm907_vm6, %v906_v35 }
 0x129 PF: > { %s17_s1 = sadd.s32 1, %s1245_s1   ;;  %s1423_s21 = smov %s1241_s22 }
 0x12a   : > { %p14_p5 = scmp.ge.s32.totalorder %s17_s1, 4   ;;  %s1424_s22 = smov %s1426_s23 }
 0x12c   :  { %16 = sbr.rel (!%p14_p5) target bundleno = 2 (0x2), region = 85 }

// kernel: decoder_block_forward.6
= control target key start
LH: loop header
LB: loop body
LE: loop exit
PB: predicated region body
PF: predicated region fallthrough
CT: control target
= control target key end

     0   :  { %vm138_vm0 = vcmask 261120   ;;  %vm324_vm1 = vcmask 519168   ;;  %vm341_vm2 = vcmask 523264   ;;  %vm432_vm3 = vcmask 1040384   ;;  %s772_s3 = inlined_call_operand.vmem [shape: bf16[32,64], index: 3, kind: input, shape index: {}]   ;;  %s773_s0 = inlined_call_operand.vmem [shape: bf16[128,32], index: 0, kind: input, shape index: {}]   ;;  %s774_s1 = inlined_call_operand.vmem [shape: f32[1,32], index: 1, kind: input, shape index: {}]   ;;  %s775_s2 = inlined_call_operand.vmem [shape: f32[1,32], index: 2, kind: input, shape index: {}]   ;;  %s776_s4 = inlined_call_operand.vmem [shape: bf16[128,64], index: 4, kind: output, shape index: {0}]   ;;  %s777_s5 = inlined_call_operand.vmem [shape: f32[1,2,64], index: 5, kind: output, shape index: {1}]  }
   0x1   :  { %v561_v0 = vld [vmem:[%s772_s3] sm:$0xff]   ;;  %v562_v1 = vld [vmem:[%s772_s3 + $0x8] sm:$0xff]   ;;  %v521_v7 = vld [vmem:[%s773_s0 + $0x10] sm:$0xff]   ;;  %vm434_vm4 = vcmask 517120  }
   0x2   :  { %537 = vmatprep.subr.bf16.mxu0 %v561_v0  ;;  %v489_v2 = vld [vmem:[%s773_s0] sm:$0xff]   ;;  %557 = vmatprep.subr.bf16.mxu1 %v561_v0  ;;  %v520_v6 = vld [vmem:[%s773_s0 + $0x8] sm:$0xff]   ;;  %v522_v8 = vld [vmem:[%s773_s0 + $0x18] sm:$0xff]   ;;  %v498_v12 = vunpack.c.l.bf16 %v521_v7  ;;  %v499_v13 = vunpack.c.h.bf16 %v521_v7 }
   0x3   :  { %v605_v3 = vld [vmem:[%s774_s1] ss:$0 sm:$0xff]  ;;  %538 = vmatpush3.bf16.msra.mxu0 %v561_v0  ;;  %v490_v4 = vunpack.c.l.bf16 %v489_v2  ;;  %v491_v5 = vunpack.c.h.bf16 %v489_v2  ;;  %559 = vmatpush3.bf16.msra.mxu1 %v561_v0  ;;  %v494_v10 = vunpack.c.l.bf16 %v520_v6  ;;  %v495_v11 = vunpack.c.h.bf16 %v520_v6  ;;  %v524_v35 = vld [vmem:[%s773_s0 + $0x28] sm:$0xff]   ;;  %v525_v40 = vld [vmem:[%s773_s0 + $0x30] sm:$0xff]  }
   0x4   :  { %539 = vmatprep.subr.bf16.mxu0 %v562_v1  ;;  %v619_v9 = vld [vmem:[%s775_s2] ss:$0 sm:$0xff]  ;;  %558 = vmatprep.subr.bf16.mxu1 %v562_v1  ;;  %v502_v16 = vunpack.c.l.bf16 %v522_v8  ;;  %v503_v17 = vunpack.c.h.bf16 %v522_v8  ;;  %v63_v20 = vmul.f32 %v498_v12, %v605_v3  ;;  %v64_v21 = vmul.f32 %v499_v13, %v605_v3  ;;  %v526_v44 = vld [vmem:[%s773_s0 + $0x38] sm:$0xff]  }
   0x5   :  { %v59_v14 = vmul.f32 %v490_v4, %v605_v3  ;;  %v60_v15 = vmul.f32 %v491_v5, %v605_v3  ;;  %v61_v18 = vmul.f32 %v494_v10, %v605_v3  ;;  %v62_v19 = vmul.f32 %v495_v11, %v605_v3  ;;  %v523_v30 = vld [vmem:[%s773_s0 + $0x20] sm:$0xff]  }
   0x6   :  { %v65_v24 = vmul.f32 %v502_v16, %v605_v3  ;;  %v66_v25 = vmul.f32 %v503_v17, %v605_v3  ;;  %v86_v28 = vadd.f32 %v619_v9, %v63_v20  ;;  %v87_v29 = vadd.f32 %v619_v9, %v64_v21 }
   0x7   :  { %540 = vmatpush3.bf16.msra.mxu0 %v562_v1  ;;  %v82_v22 = vadd.f32 %v619_v9, %v59_v14  ;;  %v83_v23 = vadd.f32 %v619_v9, %v60_v15  ;;  %v84_v26 = vadd.f32 %v619_v9, %v61_v18  ;;  %v85_v27 = vadd.f32 %v619_v9, %v62_v19 }
   0x8   :  { %560 = vmatpush3.bf16.msra.mxu1 %v562_v1  ;;  %v88_v33 = vadd.f32 %v619_v9, %v65_v24  ;;  %v89_v34 = vadd.f32 %v619_v9, %v66_v25  ;;  %v102_v38 = vmax.f32 %v86_v28, 0.0  ;;  %v103_v39 = vmax.f32 %v87_v29, 0.0 }
   0x9   :  { %v98_v31 = vmax.f32 %v82_v22, 0.0  ;;  %v99_v32 = vmax.f32 %v83_v23, 0.0  ;;  %v100_v36 = vmax.f32 %v84_v26, 0.0  ;;  %v101_v37 = vmax.f32 %v85_v27, 0.0 }
   0xa   :  { %v104_v42 = vmax.f32 %v88_v33, 0.0  ;;  %v506_v43 = vunpack.c.l.bf16 %v523_v30  ;;  %v116_v46 = vpack.c.bf16 %v103_v39, %v102_v38  ;;  %v507_v47 = vunpack.c.h.bf16 %v523_v30 }
   0xb   :  { %v114_v41 = vpack.c.bf16 %v99_v32, %v98_v31  ;;  %v115_v45 = vpack.c.bf16 %v101_v37, %v100_v36  ;;  %v510_v48 = vunpack.c.l.bf16 %v524_v35  ;;  %v105_v49 = vmax.f32 %v89_v34, 0.0 }
   0xc   :  { %v67_v50 = vmul.f32 %v506_v43, %v605_v3  ;;  %v511_v51 = vunpack.c.h.bf16 %v524_v35  ;;  %v514_v52 = vunpack.c.l.bf16 %v525_v40  ;;  %v68_v53 = vmul.f32 %v507_v47, %v605_v3 }
   0xd   :  { %541 = vmatprep.mubr.msk.bf16.mxu0 %vm138_vm0, %v114_v41  ;;  %v69_v54 = vmul.f32 %v510_v48, %v605_v3  ;;  %v515_v55 = vunpack.c.h.bf16 %v525_v40  ;;  %v518_v56 = vunpack.c.l.bf16 %v526_v44  ;;  %v519_v60 = vunpack.c.h.bf16 %v526_v44 }
   0xe   :  { %542 = vmatmul.mubr.msk.bf16.vlgmr.msra.gmra.mrb[0].mxu0 %vm138_vm0, %v115_v45  ;;  %v90_v57 = vadd.f32 %v619_v9, %v67_v50  ;;  %v70_v58 = vmul.f32 %v511_v51, %v605_v3  ;;  %v71_v59 = vmul.f32 %v514_v52, %v605_v3  ;;  %v91_v61 = vadd.f32 %v619_v9, %v68_v53 }
   0xf   :  { %545 = vmatprep.mubr.msk.bf16.mxu0 %vm138_vm0, %v116_v46  ;;  %v92_v62 = vadd.f32 %v619_v9, %v69_v54  ;;  %v72_v63 = vmul.f32 %v515_v55, %v605_v3  ;;  %v73_v0 = vmul.f32 %v518_v56, %v605_v3  ;;  %v74_v5 = vmul.f32 %v519_v60, %v605_v3 }
  0x10   :  { %v106_v1 = vmax.f32 %v90_v57, 0.0  ;;  %v93_v2 = vadd.f32 %v619_v9, %v70_v58  ;;  %v94_v4 = vadd.f32 %v619_v9, %v71_v59  ;;  %v117_v6 = vpack.c.bf16 %v105_v49, %v104_v42 }
  0x11   :  { %v107_v7 = vmax.f32 %v91_v61, 0.0  ;;  %v108_v8 = vmax.f32 %v92_v62, 0.0  ;;  %v95_v10 = vadd.f32 %v619_v9, %v72_v63  ;;  %v96_v13 = vadd.f32 %v619_v9, %v73_v0 }
  0x12   :  { %v109_v11 = vmax.f32 %v93_v2, 0.0  ;;  %v110_v12 = vmax.f32 %v94_v4, 0.0  ;;  %v97_v14 = vadd.f32 %v619_v9, %v74_v5 }
  0x13   :  { %v118_v15 = vpack.c.bf16 %v107_v7, %v106_v1  ;;  %v111_v16 = vmax.f32 %v95_v10, 0.0  ;;  %v112_v3 = vmax.f32 %v96_v13, 0.0 }
  0x14   :  { %v119_v17 = vpack.c.bf16 %v109_v11, %v108_v8  ;;  %v113_v19 = vmax.f32 %v97_v14, 0.0 }
  0x15   :  { %549 = vmatprep.mubr.msk.bf16.mxu1 %vm138_vm0, %v118_v15  ;;  %v120_v18 = vpack.c.bf16 %v111_v16, %v110_v12 }
  0x16   :  { %546 = vmatmul.mubr.msk.bf16.gmra.mrb[4].mxu0 %vm138_vm0, %v117_v6  ;;  %550 = vmatmul.mubr.msk.bf16.vlgmr.msra.gmra.mrb[0].mxu1 %vm138_vm0, %v119_v17  ;;  %v121_v20 = vpack.c.bf16 %v113_v19, %v112_v3 }
  0x17   :  { %553 = vmatprep.mubr.msk.bf16.mxu1 %vm138_vm0, %v120_v18 }
  0x1e   :  { %554 = vmatmul.mubr.msk.bf16.gmra.mrb[4].mxu1 %vm138_vm0, %v121_v20 }
  0xe1   :  { %v543_v21 = vpop.f32.mrb[0].mxu0 }
  0xe2   :  { %v474_v9 = vpack.c.bf16 %v543_v21, %v543_v21  ;;  %v197_v22 = vpop.f32.mrb[1].mxu0  ;;  %v381_v26 = vmul.f32 %v543_v21, %v543_v21  ;;  %v345_v35 = vsel %vm341_vm2, %v543_v21, 0.0 }
  0xe3   :  { %v472_v23 = vpack.c.bf16 %v197_v22, %v197_v22  ;;  %v379_v24 = vmul.f32 %v197_v22, %v197_v22  ;;  %v544_v25 = vpop.f32.mrb[2].mxu0  ;;  %v342_v29 = vsel %vm341_vm2, %v197_v22, 0.0 }
  0xe4   :  { %327 = vst.msk [vmem:[%s776_s4 + $0x8] sm:$0xf] %vm324_vm1, %v474_v9  ;;  %v475_v27 = vpack.c.bf16 %v544_v25, %v544_v25  ;;  %v200_v28 = vpop.f32.mrb[3].mxu0  ;;  %v382_v33 = vmul.f32 %v544_v25, %v544_v25  ;;  %v398_v40 = vsel %vm341_vm2, %v381_v26, 0.0  ;;  %v347_v42 = vsel %vm341_vm2, %v544_v25, 0.0 }
  0xe5   :  { %325 = vst.msk [vmem:[%s776_s4] sm:$0xf] %vm324_vm1, %v472_v23  ;;  %v473_v30 = vpack.c.bf16 %v200_v28, %v200_v28  ;;  %v343_v31 = vsel %vm341_vm2, %v200_v28, 0.0  ;;  %v380_v32 = vmul.f32 %v200_v28, %v200_v28  ;;  %v395_v36 = vsel %vm341_vm2, %v379_v24, 0.0 }
  0xe6   :  { %328 = vst.msk [vmem:[%s776_s4 + $0xc] sm:$0xf] %vm324_vm1, %v475_v27  ;;  %v344_v34 = vadd.f32 %v343_v31, %v342_v29  ;;  %v400_v43 = vsel %vm341_vm2, %v382_v33, 0.0 }
  0xe7   :  { %326 = vst.msk [vmem:[%s776_s4 + $0x4] sm:$0xf] %vm324_vm1, %v473_v30  ;;  %v396_v37 = vsel %vm341_vm2, %v380_v32, 0.0 }
  0xe8   :  { %v346_v38 = vadd.f32 %v345_v35, %v344_v34  ;;  %v397_v39 = vadd.f32 %v396_v37, %v395_v36 }
  0xe9   :  { %v547_v41 = vpop.f32.mrb[4].mxu0  ;;  %v551_v47 = vpop.f32.mrb[0].mxu1 }
  0xea   :  { %v399_v44 = vadd.f32 %v398_v40, %v397_v39  ;;  %v478_v45 = vpack.c.bf16 %v547_v41, %v547_v41  ;;  %v213_v46 = vpop.f32.mrb[5].mxu0  ;;  %v348_v49 = vadd.f32 %v347_v42, %v346_v38  ;;  %v229_v53 = vpop.f32.mrb[1].mxu1  ;;  %v385_v58 = vmul.f32 %v547_v41, %v547_v41 }
  0xeb   :  { %v476_v48 = vpack.c.bf16 %v213_v46, %v213_v46  ;;  %v349_v50 = vsel %vm341_vm2, %v213_v46, 0.0  ;;  %v383_v51 = vmul.f32 %v213_v46, %v213_v46  ;;  %v548_v52 = vpop.f32.mrb[6].mxu0  ;;  %v552_v57 = vpop.f32.mrb[2].mxu1  ;;  %v482_v2 = vpack.c.bf16 %v551_v47, %v551_v47 }
  0xec   :  { %331 = vst.msk [vmem:[%s776_s4 + $0x18] sm:$0xf] %vm324_vm1, %v478_v45  ;;  %v401_v54 = vadd.f32 %v400_v43, %v399_v44  ;;  %v479_v55 = vpack.c.bf16 %v548_v52, %v548_v52  ;;  %v216_v56 = vpop.f32.mrb[7].mxu0  ;;  %v350_v59 = vadd.f32 %v349_v50, %v348_v49  ;;  %v232_v62 = vpop.f32.mrb[3].mxu1  ;;  %v353_v4 = vsel %vm341_vm2, %v547_v41, 0.0 }
  0xed   :  { %329 = vst.msk [vmem:[%s776_s4 + $0x10] sm:$0xf] %vm324_vm1, %v476_v48  ;;  %v402_v60 = vsel %vm341_vm2, %v383_v51, 0.0  ;;  %v477_v61 = vpack.c.bf16 %v216_v56, %v216_v56  ;;  %v351_v0 = vsel %vm341_vm2, %v216_v56, 0.0  ;;  %v384_v1 = vmul.f32 %v216_v56, %v216_v56  ;;  %335 = vst.msk [vmem:[%s776_s4 + $0x28] sm:$0xf] %vm324_vm1, %v482_v2 }
  0xee   :  { %v403_v63 = vadd.f32 %v402_v60, %v401_v54  ;;  %332 = vst.msk [vmem:[%s776_s4 + $0x1c] sm:$0xf] %vm324_vm1, %v479_v55  ;;  %v352_v5 = vadd.f32 %v351_v0, %v350_v59  ;;  %v386_v6 = vmul.f32 %v548_v52, %v548_v52  ;;  %v480_v8 = vpack.c.bf16 %v229_v53, %v229_v53 }
  0xef   :  { %330 = vst.msk [vmem:[%s776_s4 + $0x14] sm:$0xf] %vm324_vm1, %v477_v61  ;;  %v404_v7 = vsel %vm341_vm2, %v384_v1, 0.0  ;;  %v387_v10 = vmul.f32 %v229_v53, %v229_v53  ;;  %v483_v13 = vpack.c.bf16 %v552_v57, %v552_v57  ;;  %v406_v14 = vsel %vm341_vm2, %v385_v58, 0.0 }
  0xf0   :  { %v354_v11 = vadd.f32 %v353_v4, %v352_v5  ;;  %v405_v12 = vadd.f32 %v404_v7, %v403_v63  ;;  %v355_v15 = vsel %vm341_vm2, %v548_v52, 0.0  ;;  %333 = vst.msk [vmem:[%s776_s4 + $0x20] sm:$0xf] %vm324_vm1, %v480_v8  ;;  %v357_v16 = vsel %vm341_vm2, %v229_v53, 0.0 }
  0xf1   :  { %v481_v17 = vpack.c.bf16 %v232_v62, %v232_v62  ;;  %v555_v18 = vpop.f32.mrb[4].mxu1  ;;  %336 = vst.msk [vmem:[%s776_s4 + $0x2c] sm:$0xf] %vm324_vm1, %v483_v13  ;;  %v408_v21 = vsel %vm341_vm2, %v386_v6, 0.0  ;;  %v410_v9 = vsel %vm341_vm2, %v387_v10, 0.0  ;;  %v388_v22 = vmul.f32 %v232_v62, %v232_v62 }
  0xf2   :  { %v407_v3 = vadd.f32 %v406_v14, %v405_v12  ;;  %v356_v19 = vadd.f32 %v355_v15, %v354_v11  ;;  %v245_v20 = vpop.f32.mrb[5].mxu1  ;;  %v486_v23 = vpack.c.bf16 %v555_v18, %v555_v18  ;;  %v389_v29 = vmul.f32 %v551_v47, %v551_v47 }
  0xf3   :  { %334 = vst.msk [vmem:[%s776_s4 + $0x24] sm:$0xf] %vm324_vm1, %v481_v17  ;;  %v556_v24 = vpop.f32.mrb[6].mxu1  ;;  %v484_v27 = vpack.c.bf16 %v245_v20, %v245_v20  ;;  %v359_v30 = vsel %vm341_vm2, %v232_v62, 0.0  ;;  %v361_v32 = vsel %vm341_vm2, %v551_v47, 0.0  ;;  %v390_v35 = vmul.f32 %v552_v57, %v552_v57 }
  0xf4   :  { %v358_v25 = vadd.f32 %v357_v16, %v356_v19  ;;  %v409_v26 = vadd.f32 %v408_v21, %v407_v3  ;;  %v248_v28 = vpop.f32.mrb[7].mxu1  ;;  %339 = vst.msk [vmem:[%s776_s4 + $0x38] sm:$0xf] %vm324_vm1, %v486_v23  ;;  %v487_v31 = vpack.c.bf16 %v556_v24, %v556_v24  ;;  %v412_v36 = vsel %vm341_vm2, %v388_v22, 0.0 }
  0xf5   :  { %337 = vst.msk [vmem:[%s776_s4 + $0x30] sm:$0xf] %vm324_vm1, %v484_v27  ;;  %v391_v37 = vmul.f32 %v245_v20, %v245_v20  ;;  %v485_v38 = vpack.c.bf16 %v248_v28, %v248_v28  ;;  %v414_v41 = vsel %vm341_vm2, %v389_v29, 0.0  ;;  %v363_v42 = vsel %vm341_vm2, %v552_v57, 0.0 }
  0xf6   :  { %v411_v33 = vadd.f32 %v410_v9, %v409_v26  ;;  %v360_v34 = vadd.f32 %v359_v30, %v358_v25  ;;  %340 = vst.msk [vmem:[%s776_s4 + $0x3c] sm:$0xf] %vm324_vm1, %v487_v31  ;;  %v365_v43 = vsel %vm341_vm2, %v245_v20, 0.0  ;;  %v416_v46 = vsel %vm341_vm2, %v390_v35, 0.0 }
  0xf7   :  { %338 = vst.msk [vmem:[%s776_s4 + $0x34] sm:$0xf] %vm324_vm1, %v485_v38  ;;  %v418_v47 = vsel %vm341_vm2, %v391_v37, 0.0  ;;  %v392_v48 = vmul.f32 %v248_v28, %v248_v28  ;;  %v393_v51 = vmul.f32 %v555_v18, %v555_v18  ;;  %v367_v52 = vsel %vm341_vm2, %v248_v28, 0.0 }
  0xf8   :  { %v362_v39 = vadd.f32 %v361_v32, %v360_v34  ;;  %v413_v40 = vadd.f32 %v412_v36, %v411_v33  ;;  %v369_v55 = vsel %vm341_vm2, %v555_v18, 0.0  ;;  %v394_v56 = vmul.f32 %v556_v24, %v556_v24 }
  0xf9   :  { %v420_v57 = vsel %vm341_vm2, %v392_v48, 0.0  ;;  %v422_v60 = vsel %vm341_vm2, %v393_v51, 0.0  ;;  %v371_v61 = vsel %vm341_vm2, %v556_v24, 0.0 }
  0xfa   :  { %v415_v44 = vadd.f32 %v414_v41, %v413_v40  ;;  %v364_v45 = vadd.f32 %v363_v42, %v362_v39  ;;  %v424_v0 = vsel %vm341_vm2, %v394_v56, 0.0 }
  0xfc   :  { %v366_v49 = vadd.f32 %v365_v43, %v364_v45  ;;  %v417_v50 = vadd.f32 %v416_v46, %v415_v44 }
  0xfe   :  { %v419_v53 = vadd.f32 %v418_v47, %v417_v50  ;;  %v368_v54 = vadd.f32 %v367_v52, %v366_v49 }
 0x100   :  { %v370_v58 = vadd.f32 %v369_v55, %v368_v54  ;;  %v421_v59 = vadd.f32 %v420_v57, %v419_v53 }
 0x102   :  { %v372_v62 = vadd.f32 %v371_v61, %v370_v58  ;;  %v423_v63 = vadd.f32 %v422_v60, %v421_v59 }
 0x104   :  { %v373_v1 = vrot.slane %v372_v62, 4  ;;  %v425_v2 = vadd.f32 %v424_v0, %v423_v63 }
 0x106   :  { %v374_v4 = vadd.f32 %v373_v1, %v372_v62  ;;  %v426_v5 = vrot.slane %v425_v2, 4 }
 0x108   :  { %v375_v6 = vrot.slane %v374_v4, 2  ;;  %v427_v7 = vadd.f32 %v426_v5, %v425_v2 }
 0x10a   :  { %v376_v8 = vadd.f32 %v375_v6, %v374_v4  ;;  %v428_v10 = vrot.slane %v427_v7, 2 }
 0x10c   :  { %v377_v11 = vrot.slane %v376_v8, 1  ;;  %v429_v12 = vadd.f32 %v428_v10, %v427_v7 }
 0x10e   :  { %v430_v13 = vrot.slane %v429_v12, 1  ;;  %v378_v14 = vadd.f32 %v377_v11, %v376_v8 }
 0x110   :  { %v431_v15 = vadd.f32 %v430_v13, %v429_v12 }
 0x112   :  { %v433_v16 = vsel %vm432_vm3, %v378_v14, %v431_v15 }
 0x113   :  { %435 = vst.msk [vmem:[%s777_s5] sm:$0x3] %vm434_vm4, %v433_v16 }

// kernel: decoder_block_forward.7
= control target key start
LH: loop header
LB: loop body
LE: loop exit
PB: predicated region body
PF: predicated region fallthrough
CT: control target
= control target key end

     0   :  { %vm108_vm0 = vcmask 523264   ;;  %s320_s0 = inlined_call_operand.vmem [shape: bf16[128,64], index: 0, kind: input, shape index: {}]   ;;  %s321_s1 = inlined_call_operand.vmem [shape: f32[1,64], index: 1, kind: input, shape index: {}]   ;;  %s322_s2 = inlined_call_operand.vmem [shape: f32[1,64], index: 2, kind: input, shape index: {}]   ;;  %s323_s3 = inlined_call_operand.vmem [shape: f32[128,64], index: 3, kind: output, shape index: {}]  }
   0x1   :  { %v132_v0 = vld [vmem:[%s320_s0] sm:$0xff]   ;;  %v163_v4 = vld [vmem:[%s320_s0 + $0x8] sm:$0xff]   ;;  %v164_v5 = vld [vmem:[%s320_s0 + $0x10] sm:$0xff]  }
   0x2   :  { %v196_v1 = vld [vmem:[%s321_s1] ss:$0 sm:$0xff]  ;;  %v133_v2 = vunpack.c.l.bf16 %v132_v0  ;;  %v134_v3 = vunpack.c.h.bf16 %v132_v0  ;;  %v165_v6 = vld [vmem:[%s320_s0 + $0x18] sm:$0xff]   ;;  %v137_v8 = vunpack.c.l.bf16 %v163_v4  ;;  %v138_v9 = vunpack.c.h.bf16 %v163_v4  ;;  %v167_v33 = vld [vmem:[%s320_s0 + $0x28] sm:$0xff]  }
   0x3   :  { %v210_v7 = vld [vmem:[%s322_s2] ss:$0 sm:$0xff]  ;;  %v141_v10 = vunpack.c.l.bf16 %v164_v5  ;;  %v142_v11 = vunpack.c.h.bf16 %v164_v5  ;;  %v145_v14 = vunpack.c.l.bf16 %v165_v6  ;;  %v146_v15 = vunpack.c.h.bf16 %v165_v6  ;;  %v168_v34 = vld [vmem:[%s320_s0 + $0x30] sm:$0xff]   ;;  %v169_v39 = vld [vmem:[%s320_s0 + $0x38] sm:$0xff]  }
   0x4   :  { %v53_v12 = vmul.f32 %v133_v2, %v196_v1  ;;  %v54_v13 = vmul.f32 %v134_v3, %v196_v1  ;;  %v55_v16 = vmul.f32 %v137_v8, %v196_v1  ;;  %v56_v17 = vmul.f32 %v138_v9, %v196_v1  ;;  %v166_v28 = vld [vmem:[%s320_s0 + $0x20] sm:$0xff]  }
   0x5   :  { %v57_v18 = vmul.f32 %v141_v10, %v196_v1  ;;  %v58_v19 = vmul.f32 %v142_v11, %v196_v1  ;;  %v59_v22 = vmul.f32 %v145_v14, %v196_v1  ;;  %v60_v23 = vmul.f32 %v146_v15, %v196_v1 }
   0x6   :  { %v76_v20 = vadd.f32 %v210_v7, %v53_v12  ;;  %v77_v21 = vadd.f32 %v210_v7, %v54_v13  ;;  %v78_v24 = vadd.f32 %v210_v7, %v55_v16  ;;  %v79_v25 = vadd.f32 %v210_v7, %v56_v17 }
   0x7   :  { %v80_v26 = vadd.f32 %v210_v7, %v57_v18  ;;  %v81_v27 = vadd.f32 %v210_v7, %v58_v19  ;;  %v82_v31 = vadd.f32 %v210_v7, %v59_v22  ;;  %v83_v32 = vadd.f32 %v210_v7, %v60_v23 }
   0x8   :  { %v92_v29 = vmax.f32 %v76_v20, 0.0  ;;  %v93_v30 = vmax.f32 %v77_v21, 0.0  ;;  %v94_v35 = vmax.f32 %v78_v24, 0.0  ;;  %v95_v36 = vmax.f32 %v79_v25, 0.0 }
   0x9   :  { %v96_v37 = vmax.f32 %v80_v26, 0.0  ;;  %v97_v38 = vmax.f32 %v81_v27, 0.0  ;;  %v98_v40 = vmax.f32 %v82_v31, 0.0  ;;  %v99_v41 = vmax.f32 %v83_v32, 0.0 }
   0xa   :  { %109 = vst.msk [vmem:[%s323_s3] sm:$0xff] %vm108_vm0, %v92_v29  ;;  %110 = vst.msk [vmem:[%s323_s3 + $0x8] sm:$0xff] %vm108_vm0, %v93_v30  ;;  %v149_v42 = vunpack.c.l.bf16 %v166_v28  ;;  %v150_v43 = vunpack.c.h.bf16 %v166_v28  ;;  %v153_v44 = vunpack.c.l.bf16 %v167_v33  ;;  %v154_v45 = vunpack.c.h.bf16 %v167_v33 }
   0xb   :  { %111 = vst.msk [vmem:[%s323_s3 + $0x10] sm:$0xff] %vm108_vm0, %v94_v35  ;;  %112 = vst.msk [vmem:[%s323_s3 + $0x18] sm:$0xff] %vm108_vm0, %v95_v36  ;;  %v157_v46 = vunpack.c.l.bf16 %v168_v34  ;;  %v158_v47 = vunpack.c.h.bf16 %v168_v34  ;;  %v161_v50 = vunpack.c.l.bf16 %v169_v39  ;;  %v162_v51 = vunpack.c.h.bf16 %v169_v39 }
   0xc   :  { %113 = vst.msk [vmem:[%s323_s3 + $0x20] sm:$0xff] %vm108_vm0, %v96_v37  ;;  %114 = vst.msk [vmem:[%s323_s3 + $0x28] sm:$0xff] %vm108_vm0, %v97_v38  ;;  %v61_v48 = vmul.f32 %v149_v42, %v196_v1  ;;  %v62_v49 = vmul.f32 %v150_v43, %v196_v1  ;;  %v63_v52 = vmul.f32 %v153_v44, %v196_v1 }
   0xd   :  { %115 = vst.msk [vmem:[%s323_s3 + $0x30] sm:$0xff] %vm108_vm0, %v98_v40  ;;  %116 = vst.msk [vmem:[%s323_s3 + $0x38] sm:$0xff] %vm108_vm0, %v99_v41  ;;  %v64_v53 = vmul.f32 %v154_v45, %v196_v1  ;;  %v65_v54 = vmul.f32 %v157_v46, %v196_v1  ;;  %v66_v55 = vmul.f32 %v158_v47, %v196_v1 }
   0xe   :  { %v84_v56 = vadd.f32 %v210_v7, %v61_v48  ;;  %v85_v57 = vadd.f32 %v210_v7, %v62_v49  ;;  %v67_v58 = vmul.f32 %v161_v50, %v196_v1  ;;  %v68_v59 = vmul.f32 %v162_v51, %v196_v1 }
   0xf   :  { %v86_v60 = vadd.f32 %v210_v7, %v63_v52  ;;  %v87_v61 = vadd.f32 %v210_v7, %v64_v53  ;;  %v88_v62 = vadd.f32 %v210_v7, %v65_v54  ;;  %v89_v63 = vadd.f32 %v210_v7, %v66_v55 }
  0x10   :  { %v100_v0 = vmax.f32 %v84_v56, 0.0  ;;  %v101_v2 = vmax.f32 %v85_v57, 0.0  ;;  %v90_v3 = vadd.f32 %v210_v7, %v67_v58  ;;  %v91_v4 = vadd.f32 %v210_v7, %v68_v59 }
  0x11   :  { %v102_v5 = vmax.f32 %v86_v60, 0.0  ;;  %v103_v6 = vmax.f32 %v87_v61, 0.0  ;;  %v104_v8 = vmax.f32 %v88_v62, 0.0  ;;  %v105_v9 = vmax.f32 %v89_v63, 0.0 }
  0x12   :  { %117 = vst.msk [vmem:[%s323_s3 + $0x40] sm:$0xff] %vm108_vm0, %v100_v0  ;;  %118 = vst.msk [vmem:[%s323_s3 + $0x48] sm:$0xff] %vm108_vm0, %v101_v2  ;;  %v106_v1 = vmax.f32 %v90_v3, 0.0  ;;  %v107_v10 = vmax.f32 %v91_v4, 0.0 }
  0x13   :  { %119 = vst.msk [vmem:[%s323_s3 + $0x50] sm:$0xff] %vm108_vm0, %v102_v5  ;;  %120 = vst.msk [vmem:[%s323_s3 + $0x58] sm:$0xff] %vm108_vm0, %v103_v6 }
  0x14   :  { %121 = vst.msk [vmem:[%s323_s3 + $0x60] sm:$0xff] %vm108_vm0, %v104_v8  ;;  %122 = vst.msk [vmem:[%s323_s3 + $0x68] sm:$0xff] %vm108_vm0, %v105_v9 }
  0x15   :  { %123 = vst.msk [vmem:[%s323_s3 + $0x70] sm:$0xff] %vm108_vm0, %v106_v1  ;;  %124 = vst.msk [vmem:[%s323_s3 + $0x78] sm:$0xff] %vm108_vm0, %v107_v10 }

</bundles_post_ra>
